<compile_context>
chip_gen: v7x
topology: tpu7x:2x2x1
jax: 0.10.0
libtpu: 0.0.40
codegen_flags: <defaults>
</compile_context>

<pallas_src>
import functools
import math

import jax
import jax.numpy as jnp
from jax.experimental import pallas as pl
from jax.experimental.pallas import tpu as pltpu


# --------------------------------------------------------------------------
# RoPE tables (cos/sin halves of the torch.polar pos_cis)
# --------------------------------------------------------------------------
def precompute_pos_cis(head_dim, seq_len, theta=1e6):
    freqs = 1.0 / (
        theta ** (jnp.arange(0, head_dim, 2, dtype=jnp.float32)[: head_dim // 2] / head_dim)
    )
    t = jnp.arange(seq_len, dtype=jnp.float32)
    f = jnp.outer(t, freqs)                        # [S, Dh/2]
    return jnp.cos(f), jnp.sin(f)


def _half_permutation(n_heads, head_dim):
    """Per-head row permutation of Wq/Wk that turns the interleaved (complex-pair)
    feature order into a contiguous [evens | odds] split inside each head."""
    perm = []
    dh2 = head_dim // 2
    for h in range(n_heads):
        base = h * head_dim
        perm += [base + 2 * j for j in range(dh2)]       # even rows (real parts)
        perm += [base + 2 * j + 1 for j in range(dh2)]   # odd rows  (imag parts)
    return jnp.asarray(perm, jnp.int32)


def prepare_params(params, cos, sin, n_heads, head_dim):
    """One-time (outside jit) weight re-layout so the kernels do zero glue work.

    NOTE (correctness): the [even|odd] permutation is applied to Wq and Wk ONLY.
    Attention scores are invariant under a shared per-head feature permutation of
    Q and K, so V and Wo MUST keep the original feature order — do not reuse this
    layout for them.
    """
    d = params["wq"].shape[1]
    p_half = _half_permutation(n_heads, head_dim)
    scale = 1.0 / math.sqrt(head_dim)
    wq_half = params["wq"][p_half] * scale          # fold 1/sqrt(Dh) into the Q projection
    wk_half = params["wk"][p_half]
    wqkv = jnp.concatenate([wq_half, wk_half, params["wv"]], axis=0)      # [3D, D]
    return {
        "attn_norm_w": params["attn_norm_w"].reshape(1, d),               # f32 (VPU math)
        "ffn_norm_w": params["ffn_norm_w"].reshape(1, d),
        "wqkv": wqkv.astype(jnp.bfloat16),                                # [3D, D]  bf16
        "wo": params["wo"].astype(jnp.bfloat16),                          # [D, D]   bf16
        "w13": jnp.concatenate([params["w1"], params["w3"]], 0).astype(jnp.bfloat16),
        "w2": params["w2"].astype(jnp.bfloat16),                          # [D, Hff] bf16
        "rope_cos": cos,                                                  # [S, Dh/2] f32
        "rope_sin": sin,
    }


# --------------------------------------------------------------------------
# Kernel 1: fused  RMSNorm -> QKV(+RoPE) -> causal attention -> Wo -> +residual
# --------------------------------------------------------------------------
def _attn_block_kernel(x_ref, nw_ref, wqkv_ref, wo_ref, cos_ref, sin_ref, o_ref,
                       *, n_heads, head_dim, d_model, eps):
    x = x_ref[0].astype(jnp.float32)                         # [S, D]
    s_len = x.shape[0]
    dh2 = head_dim // 2

    # ---- RMSNorm (f32 element-wise) ----
    ms = jnp.mean(x * x, axis=-1, keepdims=True)
    xn = x * jax.lax.rsqrt(ms + eps) * nw_ref[...].astype(jnp.float32)

    # ---- ONE fused QKV projection (bf16 operands, f32 accumulation) ----
    trans_b = (((1,), (1,)), ((), ()))                       # a @ b.T without transposing b
    qkv = jax.lax.dot_general(xn.astype(jnp.bfloat16), wqkv_ref[...], trans_b,
                              preferred_element_type=jnp.float32)        # [S, 3D]

    cosf = cos_ref[...].astype(jnp.float32)                  # [S, Dh/2]
    sinf = sin_ref[...].astype(jnp.float32)

    # causal mask (diagonal kept)
    row = jax.lax.broadcasted_iota(jnp.int32, (s_len, s_len), 0)
    col = jax.lax.broadcasted_iota(jnp.int32, (s_len, s_len), 1)
    causal = col <= row

    # TODO(synk): at real n_heads / S, move heads onto a grid axis (or lax.fori_loop
    # with a VMEM accumulator) and use flash-style online softmax over KV tiles instead
    # of the statically unrolled loop + full [S,S] f32 scores below (demo shapes only).
    o_heads = []
    for h in range(n_heads):
        q_h = qkv[:, h * head_dim:(h + 1) * head_dim]                       # [S, Dh]
        k_h = qkv[:, d_model + h * head_dim:d_model + (h + 1) * head_dim]
        v_h = qkv[:, 2 * d_model + h * head_dim:2 * d_model + (h + 1) * head_dim]

        # interleaved RoPE on the [even | odd] split (1/sqrt(Dh) already folded into Wq)
        qe, qo = q_h[:, :dh2], q_h[:, dh2:]
        ke, ko = k_h[:, :dh2], k_h[:, dh2:]
        q_rot = jnp.concatenate([qe * cosf - qo * sinf, qo * cosf + qe * sinf], axis=-1)
        k_rot = jnp.concatenate([ke * cosf - ko * sinf, ko * cosf + ke * sinf], axis=-1)

        sc = jax.lax.dot_general(q_rot.astype(jnp.bfloat16), k_rot.astype(jnp.bfloat16),
                                 trans_b, preferred_element_type=jnp.float32)   # [S, S]
        sc = jnp.where(causal, sc, -jnp.inf)
        sc = sc - jnp.max(sc, axis=-1, keepdims=True)
        p = jnp.exp(sc)
        p = p * pl.reciprocal(jnp.sum(p, axis=-1, keepdims=True), approx=True)   # EUP slot
        o_heads.append(jnp.dot(p.astype(jnp.bfloat16), v_h.astype(jnp.bfloat16),
                               preferred_element_type=jnp.float32))              # [S, Dh]

    # ONE full-K output projection + ONE residual add
    o_all = jnp.concatenate(o_heads, axis=-1)                                    # [S, D]
    out = x + jax.lax.dot_general(o_all.astype(jnp.bfloat16), wo_ref[...], trans_b,
                                  preferred_element_type=jnp.float32)
    # TODO(synk): attention/resid dropout omitted (p=0 / eval mode -> identity).
    o_ref[0] = out.astype(o_ref.dtype)


def fused_attention_block(x, prep, n_heads, head_dim, eps):
    b, s, d = x.shape
    kernel = functools.partial(_attn_block_kernel, n_heads=n_heads, head_dim=head_dim,
                               d_model=d, eps=eps)
    # constant-index weight blocks: DMA'd once, resident in VMEM across the grid.
    # TODO(synk): at real sizes single-buffer these (pipeline_mode=pl.Buffered(1)) or
    #             stream Wqkv/Wo tiles over an extra grid axis for v7x's 64 MiB VMEM.
    const = lambda shape: pl.BlockSpec(shape, lambda i, _n=len(shape): (0,) * _n)
    return pl.pallas_call(
        kernel,
        grid=(b,),
        in_specs=[
            pl.BlockSpec((1, s, d), lambda i: (i, 0, 0)),    # x
            const((1, d)),                                   # attn_norm weight (f32)
            const((3 * d, d)),                               # fused [Wq*scale; Wk; Wv] (bf16)
            const((d, d)),                                   # Wo (bf16, torch [out,in] layout)
            const((s, head_dim // 2)),                       # RoPE cos
            const((s, head_dim // 2)),                       # RoPE sin
        ],
        out_specs=pl.BlockSpec((1, s, d), lambda i: (i, 0, 0)),
        out_shape=jax.ShapeDtypeStruct((b, s, d), x.dtype),
        compiler_params=pltpu.CompilerParams(
            dimension_semantics=("parallel",),               # batch axis -> both TCs on v7x
            vmem_limit_bytes=32 * 1024 * 1024,               # >= v5e's 16 MiB scoped default
        ),
    )(x, prep["attn_norm_w"], prep["wqkv"], prep["wo"], prep["rope_cos"], prep["rope_sin"])


# --------------------------------------------------------------------------
# Kernel 2: fused  RMSNorm -> SwiGLU FFN -> +residual   (on collapsed (B*S) rows)
# --------------------------------------------------------------------------
def _ffn_block_kernel(x_ref, nw_ref, w13_ref, w2_ref, o_ref, *, hidden, eps):
    x = x_ref[...].astype(jnp.float32)                       # [R, D]
    ms = jnp.mean(x * x, axis=-1, keepdims=True)
    xn = x * jax.lax.rsqrt(ms + eps) * nw_ref[...].astype(jnp.float32)

    trans_b = (((1,), (1,)), ((), ()))
    h13 = jax.lax.dot_general(xn.astype(jnp.bfloat16), w13_ref[...], trans_b,
                              preferred_element_type=jnp.float32)        # [R, 2*Hff]
    g = h13[:, :hidden]                                      # w1 x   (128-aligned slice)
    u = h13[:, hidden:]                                      # w3 x
    act = g * jax.nn.sigmoid(g) * u                          # SiLU(w1 x) * (w3 x), f32
    y = jax.lax.dot_general(act.astype(jnp.bfloat16), w2_ref[...], trans_b,
                            preferred_element_type=jnp.float32)          # [R, D]
    # TODO(synk): nn.Dropout omitted (p=0 / eval mode -> identity).
    o_ref[...] = (x + y).astype(o_ref.dtype)


def fused_ffn_block(x, prep, hidden_dim, eps, row_tile=256):
    b, s, d = x.shape
    rows = b * s
    rt = rows if rows <= row_tile else row_tile
    assert rows % rt == 0, "demo path assumes row-tile divisibility"
    x2 = x.reshape(rows, d)                                  # free leading-dim merge
    # TODO(synk): at real Hff, add an 'arbitrary' grid axis over Hff chunks with an f32
    #             VMEM accumulator instead of keeping [2*Hff, D] fully resident.
    out = pl.pallas_call(
        functools.partial(_ffn_block_kernel, hidden=hidden_dim, eps=eps),
        grid=(rows // rt,),
        in_specs=[
            pl.BlockSpec((rt, d), lambda i: (i, 0)),                 # x rows (lane/sublane-dense)
            pl.BlockSpec((1, d), lambda i: (0, 0)),                  # ffn_norm weight (f32)
            pl.BlockSpec((2 * hidden_dim, d), lambda i: (0, 0)),     # [w1; w3] bf16, resident
            pl.BlockSpec((d, hidden_dim), lambda i: (0, 0)),         # w2 bf16, resident
        ],
        out_specs=pl.BlockSpec((rt, d), lambda i: (i, 0)),
        out_shape=jax.ShapeDtypeStruct((rows, d), x.dtype),
        compiler_params=pltpu.CompilerParams(
            dimension_semantics=("parallel",),
            vmem_limit_bytes=32 * 1024 * 1024,
        ),
    )(x2, prep["ffn_norm_w"], prep["w13"], prep["w2"])
    return out.reshape(b, s, d)


# --------------------------------------------------------------------------
# TransformerBlock forward (use_moe=False, use_cache=False)
# --------------------------------------------------------------------------
def transformer_block(x, prep, n_heads, head_dim, hidden_dim, eps=1e-5):
    h1 = fused_attention_block(x, prep, n_heads, head_dim, eps)   # inputs + attn(norm(inputs))
    out = fused_ffn_block(h1, prep, hidden_dim, eps)              # h1 + ffn(norm(h1))
    past_kv = None                                                # use_cache=False
    return out, past_kv


# --------------------------------------------------------------------------
# Pure-JAX reference (mirrors the PyTorch module) for a numerical self-check
# --------------------------------------------------------------------------
def _reference_block(x, params, cos, sin, n_heads, eps):
    def rms(t, w):
        tf = t.astype(jnp.float32)
        return tf * jax.lax.rsqrt(jnp.mean(tf * tf, axis=-1, keepdims=True) + eps) * w

    b, s, d = x.shape
    dh = d // n_heads
    xn = rms(x, params["attn_norm_w"])
    q = (xn @ params["wq"].T).reshape(b, s, n_heads, dh)
    k = (xn @ params["wk"].T).reshape(b, s, n_heads, dh)
    v = (xn @ params["wv"].T).reshape(b, s, n_heads, dh)

    def rope(t):  # interleaved complex pairs (torch.polar semantics)
        tr, ti = t[..., 0::2], t[..., 1::2]
        c = cos[None, :, None, :]
        si = sin[None, :, None, :]
        return jnp.stack([tr * c - ti * si, tr * si + ti * c], axis=-1).reshape(t.shape)

    q, k = rope(q), rope(k)
    q = q.transpose(0, 2, 1, 3)
    k = k.transpose(0, 2, 1, 3)
    v = v.transpose(0, 2, 1, 3)
    sc = jnp.einsum("bhqd,bhkd->bhqk", q, k) / math.sqrt(dh)
    mask = jnp.tril(jnp.ones((s, s), bool))
    sc = jnp.where(mask[None, None], sc, -jnp.inf)
    p = jax.nn.softmax(sc, axis=-1)
    o = jnp.einsum("bhqk,bhkd->bhqd", p, v).transpose(0, 2, 1, 3).reshape(b, s, d)
    h1 = x + o @ params["wo"].T
    hn = rms(h1, params["ffn_norm_w"])
    g = hn @ params["w1"].T
    u = hn @ params["w3"].T
    return h1 + (g * jax.nn.sigmoid(g) * u) @ params["w2"].T


# --------------------------------------------------------------------------
if __name__ == "__main__":
    # LMConfig-like small config
    batch, seq_len = 2, 8
    embedding_dim = 32
    n_heads = 4
    head_dim = embedding_dim // n_heads
    multiple_of = 64
    ffn_hidden_dim = int(2 * (4 * embedding_dim) / 3)
    ffn_hidden_dim = multiple_of * ((ffn_hidden_dim + multiple_of - 1) // multiple_of)  # 128
    norm_eps = 1e-5

    key = jax.random.PRNGKey(0)
    ks = jax.random.split(key, 9)
    init = lambda k, shape: 0.02 * jax.random.normal(k, shape, dtype=jnp.float32)

    params = {
        "attn_norm_w": jnp.ones((embedding_dim,), jnp.float32),
        "ffn_norm_w": jnp.ones((embedding_dim,), jnp.float32),
        "wq": init(ks[0], (embedding_dim, embedding_dim)),
        "wk": init(ks[1], (embedding_dim, embedding_dim)),
        "wv": init(ks[2], (embedding_dim, embedding_dim)),
        "wo": init(ks[3], (embedding_dim, embedding_dim)),
        "w1": init(ks[4], (ffn_hidden_dim, embedding_dim)),
        "w2": init(ks[5], (embedding_dim, ffn_hidden_dim)),
        "w3": init(ks[6], (ffn_hidden_dim, embedding_dim)),
    }
    x = jax.random.normal(ks[7], (batch, seq_len, embedding_dim), dtype=jnp.float32)

    cos, sin = precompute_pos_cis(head_dim, seq_len)
    prep = prepare_params(params, cos, sin, n_heads, head_dim)   # one-time, outside jit

    fwd = jax.jit(functools.partial(transformer_block, n_heads=n_heads,
                                    head_dim=head_dim, hidden_dim=ffn_hidden_dim,
                                    eps=norm_eps))
    out, past_kv = fwd(x, prep)
    out = jax.block_until_ready(out)

    ref = _reference_block(x, params, cos, sin, n_heads, norm_eps)

    assert out.shape == (batch, seq_len, embedding_dim)
    assert past_kv is None
    assert bool(jnp.all(jnp.isfinite(out)))
    # bf16 weights / MXU operands + approx reciprocal -> slightly looser tolerance.
    assert bool(jnp.allclose(out, ref, atol=5e-3, rtol=5e-3)), (
        "max abs err = %e" % float(jnp.max(jnp.abs(out - ref))))
    print("KERNEL_OK")
</pallas_src>

<mosaic_0001>
module attributes {stable_mosaic.version = 11 : i64} {
  func.func @_attn_block_kernel(%arg0: i32, %arg1: memref<1x8x32xf32, #tpu.memory_space<vmem>>, %arg2: memref<1x32xf32, #tpu.memory_space<vmem>>, %arg3: memref<96x32xbf16, #tpu.memory_space<vmem>>, %arg4: memref<32x32xbf16, #tpu.memory_space<vmem>>, %arg5: memref<8x4xf32, #tpu.memory_space<vmem>>, %arg6: memref<8x4xf32, #tpu.memory_space<vmem>>, %arg7: memref<1x8x32xf32, #tpu.memory_space<vmem>>) attributes {dimension_semantics = [#tpu.dimension_semantics<parallel>], iteration_bounds = array<i64: 2>, scalar_prefetch = 0 : i64, scratch_operands = 0 : i64, tpu.core_type = #tpu.core_type<tc>, window_params = [{transform_indices = @transform_0, window_bounds = array<i64: 1, 8, 32>}, {pipeline_mode = #tpu.pipeline_mode<synchronous>, transform_indices = @transform_1, window_bounds = array<i64: 1, 32>}, {pipeline_mode = #tpu.pipeline_mode<synchronous>, transform_indices = @transform_2, window_bounds = array<i64: 96, 32>}, {pipeline_mode = #tpu.pipeline_mode<synchronous>, transform_indices = @transform_3, window_bounds = array<i64: 32, 32>}, {pipeline_mode = #tpu.pipeline_mode<synchronous>, transform_indices = @transform_4, window_bounds = array<i64: 8, 4>}, {pipeline_mode = #tpu.pipeline_mode<synchronous>, transform_indices = @transform_5, window_bounds = array<i64: 8, 4>}, {transform_indices = @transform_6, window_bounds = array<i64: 1, 8, 32>}]} {
    %c0 = arith.constant 0 : index
    %c0_0 = arith.constant 0 : index
    %c0_1 = arith.constant 0 : index
    %0 = vector.load %arg1[%c0, %c0_0, %c0_1] : memref<1x8x32xf32, #tpu.memory_space<vmem>>, vector<1x8x32xf32>
    %1 = vector.shape_cast %0 : vector<1x8x32xf32> to vector<8x32xf32>
    %2 = arith.mulf %1, %1 : vector<8x32xf32>
    %cst = arith.constant dense<0.000000e+00> : vector<8xf32>
    %3 = vector.multi_reduction <add>, %2, %cst [1] : vector<8x32xf32> to vector<8xf32>
    %4 = vector.shape_cast %3 : vector<8xf32> to vector<8x1xf32>
    %cst_2 = arith.constant 3.200000e+01 : f32
    %5 = vector.broadcast %cst_2 : f32 to vector<8x1xf32>
    %6 = arith.divf %4, %5 : vector<8x1xf32>
    %cst_3 = arith.constant 9.99999974E-6 : f32
    %7 = vector.broadcast %cst_3 : f32 to vector<8x1xf32>
    %8 = arith.addf %6, %7 : vector<8x1xf32>
    %9 = math.rsqrt %8 : vector<8x1xf32>
    %10 = vector.broadcast %9 : vector<8x1xf32> to vector<8x32xf32>
    %11 = arith.mulf %1, %10 : vector<8x32xf32>
    %c0_4 = arith.constant 0 : index
    %c0_5 = arith.constant 0 : index
    %12 = vector.load %arg2[%c0_4, %c0_5] : memref<1x32xf32, #tpu.memory_space<vmem>>, vector<1x32xf32>
    %13 = vector.broadcast %12 : vector<1x32xf32> to vector<8x32xf32>
    %14 = arith.mulf %11, %13 : vector<8x32xf32>
    %15 = arith.truncf %14 : vector<8x32xf32> to vector<8x32xbf16>
    %c0_6 = arith.constant 0 : index
    %c0_7 = arith.constant 0 : index
    %16 = vector.load %arg3[%c0_6, %c0_7] : memref<96x32xbf16, #tpu.memory_space<vmem>>, vector<96x32xbf16>
    %cst_8 = arith.constant dense<0.000000e+00> : vector<8x96xf32>
    %17 = tpu.matmul %15, %16, %cst_8 {dimension_numbers = #tpu.dot_dimension_numbers<[1], [1], [0], [0], [0, 0, 1, 0], [], []>} : vector<8x32xbf16>, vector<96x32xbf16>, vector<8x96xf32> -> vector<8x96xf32>
    %c0_9 = arith.constant 0 : index
    %c0_10 = arith.constant 0 : index
    %18 = vector.load %arg5[%c0_9, %c0_10] : memref<8x4xf32, #tpu.memory_space<vmem>>, vector<8x4xf32>
    %c0_11 = arith.constant 0 : index
    %c0_12 = arith.constant 0 : index
    %19 = vector.load %arg6[%c0_11, %c0_12] : memref<8x4xf32, #tpu.memory_space<vmem>>, vector<8x4xf32>
    %20 = tpu.iota {dimensions = array<i32: 0>} : vector<8x8xi32>
    %21 = tpu.iota {dimensions = array<i32: 1>} : vector<8x8xi32>
    %22 = arith.cmpi sle, %21, %20 : vector<8x8xi32>
    %23 = vector.extract_strided_slice %17 {offsets = [0, 0], sizes = [8, 8], strides = [1, 1]} : vector<8x96xf32> to vector<8x8xf32>
    %24 = vector.extract_strided_slice %17 {offsets = [0, 32], sizes = [8, 8], strides = [1, 1]} : vector<8x96xf32> to vector<8x8xf32>
    %25 = vector.extract_strided_slice %17 {offsets = [0, 64], sizes = [8, 8], strides = [1, 1]} : vector<8x96xf32> to vector<8x8xf32>
    %26 = vector.extract_strided_slice %23 {offsets = [0, 0], sizes = [8, 4], strides = [1, 1]} : vector<8x8xf32> to vector<8x4xf32>
    %27 = vector.extract_strided_slice %23 {offsets = [0, 4], sizes = [8, 4], strides = [1, 1]} : vector<8x8xf32> to vector<8x4xf32>
    %28 = vector.extract_strided_slice %24 {offsets = [0, 0], sizes = [8, 4], strides = [1, 1]} : vector<8x8xf32> to vector<8x4xf32>
    %29 = vector.extract_strided_slice %24 {offsets = [0, 4], sizes = [8, 4], strides = [1, 1]} : vector<8x8xf32> to vector<8x4xf32>
    %30 = arith.mulf %26, %18 : vector<8x4xf32>
    %31 = arith.mulf %27, %19 : vector<8x4xf32>
    %32 = arith.subf %30, %31 : vector<8x4xf32>
    %33 = arith.mulf %27, %18 : vector<8x4xf32>
    %34 = arith.mulf %26, %19 : vector<8x4xf32>
    %35 = arith.addf %33, %34 : vector<8x4xf32>
    %36 = tpu.concatenate %32, %35 in 1 : vector<8x4xf32>, vector<8x4xf32> -> vector<8x8xf32>
    %37 = arith.mulf %28, %18 : vector<8x4xf32>
    %38 = arith.mulf %29, %19 : vector<8x4xf32>
    %39 = arith.subf %37, %38 : vector<8x4xf32>
    %40 = arith.mulf %29, %18 : vector<8x4xf32>
    %41 = arith.mulf %28, %19 : vector<8x4xf32>
    %42 = arith.addf %40, %41 : vector<8x4xf32>
    %43 = tpu.concatenate %39, %42 in 1 : vector<8x4xf32>, vector<8x4xf32> -> vector<8x8xf32>
    %44 = arith.truncf %36 : vector<8x8xf32> to vector<8x8xbf16>
    %45 = arith.truncf %43 : vector<8x8xf32> to vector<8x8xbf16>
    %cst_13 = arith.constant dense<0.000000e+00> : vector<8x8xf32>
    %46 = tpu.matmul %44, %45, %cst_13 {dimension_numbers = #tpu.dot_dimension_numbers<[1], [1], [0], [0], [0, 0, 1, 0], [], []>} : vector<8x8xbf16>, vector<8x8xbf16>, vector<8x8xf32> -> vector<8x8xf32>
    %cst_14 = arith.constant 0xFF800000 : f32
    %47 = vector.broadcast %cst_14 : f32 to vector<8x8xf32>
    %48 = arith.select %22, %46, %47 : vector<8x8xi1>, vector<8x8xf32>
    %cst_15 = arith.constant dense<0xFF800000> : vector<8xf32>
    %49 = vector.multi_reduction <maximumf>, %48, %cst_15 [1] : vector<8x8xf32> to vector<8xf32>
    %50 = vector.shape_cast %49 : vector<8xf32> to vector<8x1xf32>
    %51 = vector.broadcast %50 : vector<8x1xf32> to vector<8x8xf32>
    %52 = arith.subf %48, %51 : vector<8x8xf32>
    %53 = math.exp %52 : vector<8x8xf32>
    %cst_16 = arith.constant dense<0.000000e+00> : vector<8xf32>
    %54 = vector.multi_reduction <add>, %53, %cst_16 [1] : vector<8x8xf32> to vector<8xf32>
    %55 = vector.shape_cast %54 : vector<8xf32> to vector<8x1xf32>
    %56 = tpu.reciprocal %55 {approx = true} : vector<8x1xf32> -> vector<8x1xf32>
    %57 = vector.broadcast %56 : vector<8x1xf32> to vector<8x8xf32>
    %58 = arith.mulf %53, %57 : vector<8x8xf32>
    %59 = arith.truncf %58 : vector<8x8xf32> to vector<8x8xbf16>
    %60 = arith.truncf %25 : vector<8x8xf32> to vector<8x8xbf16>
    %cst_17 = arith.constant dense<0.000000e+00> : vector<8x8xf32>
    %61 = tpu.matmul %59, %60, %cst_17 {dimension_numbers = #tpu.dot_dimension_numbers<[1], [0], [0], [1], [0, 0, 1, 1], [], []>} : vector<8x8xbf16>, vector<8x8xbf16>, vector<8x8xf32> -> vector<8x8xf32>
    %62 = vector.extract_strided_slice %17 {offsets = [0, 8], sizes = [8, 8], strides = [1, 1]} : vector<8x96xf32> to vector<8x8xf32>
    %63 = vector.extract_strided_slice %17 {offsets = [0, 40], sizes = [8, 8], strides = [1, 1]} : vector<8x96xf32> to vector<8x8xf32>
    %64 = vector.extract_strided_slice %17 {offsets = [0, 72], sizes = [8, 8], strides = [1, 1]} : vector<8x96xf32> to vector<8x8xf32>
    %65 = vector.extract_strided_slice %62 {offsets = [0, 0], sizes = [8, 4], strides = [1, 1]} : vector<8x8xf32> to vector<8x4xf32>
    %66 = vector.extract_strided_slice %62 {offsets = [0, 4], sizes = [8, 4], strides = [1, 1]} : vector<8x8xf32> to vector<8x4xf32>
    %67 = vector.extract_strided_slice %63 {offsets = [0, 0], sizes = [8, 4], strides = [1, 1]} : vector<8x8xf32> to vector<8x4xf32>
    %68 = vector.extract_strided_slice %63 {offsets = [0, 4], sizes = [8, 4], strides = [1, 1]} : vector<8x8xf32> to vector<8x4xf32>
    %69 = arith.mulf %65, %18 : vector<8x4xf32>
    %70 = arith.mulf %66, %19 : vector<8x4xf32>
    %71 = arith.subf %69, %70 : vector<8x4xf32>
    %72 = arith.mulf %66, %18 : vector<8x4xf32>
    %73 = arith.mulf %65, %19 : vector<8x4xf32>
    %74 = arith.addf %72, %73 : vector<8x4xf32>
    %75 = tpu.concatenate %71, %74 in 1 : vector<8x4xf32>, vector<8x4xf32> -> vector<8x8xf32>
    %76 = arith.mulf %67, %18 : vector<8x4xf32>
    %77 = arith.mulf %68, %19 : vector<8x4xf32>
    %78 = arith.subf %76, %77 : vector<8x4xf32>
    %79 = arith.mulf %68, %18 : vector<8x4xf32>
    %80 = arith.mulf %67, %19 : vector<8x4xf32>
    %81 = arith.addf %79, %80 : vector<8x4xf32>
    %82 = tpu.concatenate %78, %81 in 1 : vector<8x4xf32>, vector<8x4xf32> -> vector<8x8xf32>
    %83 = arith.truncf %75 : vector<8x8xf32> to vector<8x8xbf16>
    %84 = arith.truncf %82 : vector<8x8xf32> to vector<8x8xbf16>
    %cst_18 = arith.constant dense<0.000000e+00> : vector<8x8xf32>
    %85 = tpu.matmul %83, %84, %cst_18 {dimension_numbers = #tpu.dot_dimension_numbers<[1], [1], [0], [0], [0, 0, 1, 0], [], []>} : vector<8x8xbf16>, vector<8x8xbf16>, vector<8x8xf32> -> vector<8x8xf32>
    %cst_19 = arith.constant 0xFF800000 : f32
    %86 = vector.broadcast %cst_19 : f32 to vector<8x8xf32>
    %87 = arith.select %22, %85, %86 : vector<8x8xi1>, vector<8x8xf32>
    %cst_20 = arith.constant dense<0xFF800000> : vector<8xf32>
    %88 = vector.multi_reduction <maximumf>, %87, %cst_20 [1] : vector<8x8xf32> to vector<8xf32>
    %89 = vector.shape_cast %88 : vector<8xf32> to vector<8x1xf32>
    %90 = vector.broadcast %89 : vector<8x1xf32> to vector<8x8xf32>
    %91 = arith.subf %87, %90 : vector<8x8xf32>
    %92 = math.exp %91 : vector<8x8xf32>
    %cst_21 = arith.constant dense<0.000000e+00> : vector<8xf32>
    %93 = vector.multi_reduction <add>, %92, %cst_21 [1] : vector<8x8xf32> to vector<8xf32>
    %94 = vector.shape_cast %93 : vector<8xf32> to vector<8x1xf32>
    %95 = tpu.reciprocal %94 {approx = true} : vector<8x1xf32> -> vector<8x1xf32>
    %96 = vector.broadcast %95 : vector<8x1xf32> to vector<8x8xf32>
    %97 = arith.mulf %92, %96 : vector<8x8xf32>
    %98 = arith.truncf %97 : vector<8x8xf32> to vector<8x8xbf16>
    %99 = arith.truncf %64 : vector<8x8xf32> to vector<8x8xbf16>
    %cst_22 = arith.constant dense<0.000000e+00> : vector<8x8xf32>
    %100 = tpu.matmul %98, %99, %cst_22 {dimension_numbers = #tpu.dot_dimension_numbers<[1], [0], [0], [1], [0, 0, 1, 1], [], []>} : vector<8x8xbf16>, vector<8x8xbf16>, vector<8x8xf32> -> vector<8x8xf32>
    %101 = vector.extract_strided_slice %17 {offsets = [0, 16], sizes = [8, 8], strides = [1, 1]} : vector<8x96xf32> to vector<8x8xf32>
    %102 = vector.extract_strided_slice %17 {offsets = [0, 48], sizes = [8, 8], strides = [1, 1]} : vector<8x96xf32> to vector<8x8xf32>
    %103 = vector.extract_strided_slice %17 {offsets = [0, 80], sizes = [8, 8], strides = [1, 1]} : vector<8x96xf32> to vector<8x8xf32>
    %104 = vector.extract_strided_slice %101 {offsets = [0, 0], sizes = [8, 4], strides = [1, 1]} : vector<8x8xf32> to vector<8x4xf32>
    %105 = vector.extract_strided_slice %101 {offsets = [0, 4], sizes = [8, 4], strides = [1, 1]} : vector<8x8xf32> to vector<8x4xf32>
    %106 = vector.extract_strided_slice %102 {offsets = [0, 0], sizes = [8, 4], strides = [1, 1]} : vector<8x8xf32> to vector<8x4xf32>
    %107 = vector.extract_strided_slice %102 {offsets = [0, 4], sizes = [8, 4], strides = [1, 1]} : vector<8x8xf32> to vector<8x4xf32>
    %108 = arith.mulf %104, %18 : vector<8x4xf32>
    %109 = arith.mulf %105, %19 : vector<8x4xf32>
    %110 = arith.subf %108, %109 : vector<8x4xf32>
    %111 = arith.mulf %105, %18 : vector<8x4xf32>
    %112 = arith.mulf %104, %19 : vector<8x4xf32>
    %113 = arith.addf %111, %112 : vector<8x4xf32>
    %114 = tpu.concatenate %110, %113 in 1 : vector<8x4xf32>, vector<8x4xf32> -> vector<8x8xf32>
    %115 = arith.mulf %106, %18 : vector<8x4xf32>
    %116 = arith.mulf %107, %19 : vector<8x4xf32>
    %117 = arith.subf %115, %116 : vector<8x4xf32>
    %118 = arith.mulf %107, %18 : vector<8x4xf32>
    %119 = arith.mulf %106, %19 : vector<8x4xf32>
    %120 = arith.addf %118, %119 : vector<8x4xf32>
    %121 = tpu.concatenate %117, %120 in 1 : vector<8x4xf32>, vector<8x4xf32> -> vector<8x8xf32>
    %122 = arith.truncf %114 : vector<8x8xf32> to vector<8x8xbf16>
    %123 = arith.truncf %121 : vector<8x8xf32> to vector<8x8xbf16>
    %cst_23 = arith.constant dense<0.000000e+00> : vector<8x8xf32>
    %124 = tpu.matmul %122, %123, %cst_23 {dimension_numbers = #tpu.dot_dimension_numbers<[1], [1], [0], [0], [0, 0, 1, 0], [], []>} : vector<8x8xbf16>, vector<8x8xbf16>, vector<8x8xf32> -> vector<8x8xf32>
    %cst_24 = arith.constant 0xFF800000 : f32
    %125 = vector.broadcast %cst_24 : f32 to vector<8x8xf32>
    %126 = arith.select %22, %124, %125 : vector<8x8xi1>, vector<8x8xf32>
    %cst_25 = arith.constant dense<0xFF800000> : vector<8xf32>
    %127 = vector.multi_reduction <maximumf>, %126, %cst_25 [1] : vector<8x8xf32> to vector<8xf32>
    %128 = vector.shape_cast %127 : vector<8xf32> to vector<8x1xf32>
    %129 = vector.broadcast %128 : vector<8x1xf32> to vector<8x8xf32>
    %130 = arith.subf %126, %129 : vector<8x8xf32>
    %131 = math.exp %130 : vector<8x8xf32>
    %cst_26 = arith.constant dense<0.000000e+00> : vector<8xf32>
    %132 = vector.multi_reduction <add>, %131, %cst_26 [1] : vector<8x8xf32> to vector<8xf32>
    %133 = vector.shape_cast %132 : vector<8xf32> to vector<8x1xf32>
    %134 = tpu.reciprocal %133 {approx = true} : vector<8x1xf32> -> vector<8x1xf32>
    %135 = vector.broadcast %134 : vector<8x1xf32> to vector<8x8xf32>
    %136 = arith.mulf %131, %135 : vector<8x8xf32>
    %137 = arith.truncf %136 : vector<8x8xf32> to vector<8x8xbf16>
    %138 = arith.truncf %103 : vector<8x8xf32> to vector<8x8xbf16>
    %cst_27 = arith.constant dense<0.000000e+00> : vector<8x8xf32>
    %139 = tpu.matmul %137, %138, %cst_27 {dimension_numbers = #tpu.dot_dimension_numbers<[1], [0], [0], [1], [0, 0, 1, 1], [], []>} : vector<8x8xbf16>, vector<8x8xbf16>, vector<8x8xf32> -> vector<8x8xf32>
    %140 = vector.extract_strided_slice %17 {offsets = [0, 24], sizes = [8, 8], strides = [1, 1]} : vector<8x96xf32> to vector<8x8xf32>
    %141 = vector.extract_strided_slice %17 {offsets = [0, 56], sizes = [8, 8], strides = [1, 1]} : vector<8x96xf32> to vector<8x8xf32>
    %142 = vector.extract_strided_slice %17 {offsets = [0, 88], sizes = [8, 8], strides = [1, 1]} : vector<8x96xf32> to vector<8x8xf32>
    %143 = vector.extract_strided_slice %140 {offsets = [0, 0], sizes = [8, 4], strides = [1, 1]} : vector<8x8xf32> to vector<8x4xf32>
    %144 = vector.extract_strided_slice %140 {offsets = [0, 4], sizes = [8, 4], strides = [1, 1]} : vector<8x8xf32> to vector<8x4xf32>
    %145 = vector.extract_strided_slice %141 {offsets = [0, 0], sizes = [8, 4], strides = [1, 1]} : vector<8x8xf32> to vector<8x4xf32>
    %146 = vector.extract_strided_slice %141 {offsets = [0, 4], sizes = [8, 4], strides = [1, 1]} : vector<8x8xf32> to vector<8x4xf32>
    %147 = arith.mulf %143, %18 : vector<8x4xf32>
    %148 = arith.mulf %144, %19 : vector<8x4xf32>
    %149 = arith.subf %147, %148 : vector<8x4xf32>
    %150 = arith.mulf %144, %18 : vector<8x4xf32>
    %151 = arith.mulf %143, %19 : vector<8x4xf32>
    %152 = arith.addf %150, %151 : vector<8x4xf32>
    %153 = tpu.concatenate %149, %152 in 1 : vector<8x4xf32>, vector<8x4xf32> -> vector<8x8xf32>
    %154 = arith.mulf %145, %18 : vector<8x4xf32>
    %155 = arith.mulf %146, %19 : vector<8x4xf32>
    %156 = arith.subf %154, %155 : vector<8x4xf32>
    %157 = arith.mulf %146, %18 : vector<8x4xf32>
    %158 = arith.mulf %145, %19 : vector<8x4xf32>
    %159 = arith.addf %157, %158 : vector<8x4xf32>
    %160 = tpu.concatenate %156, %159 in 1 : vector<8x4xf32>, vector<8x4xf32> -> vector<8x8xf32>
    %161 = arith.truncf %153 : vector<8x8xf32> to vector<8x8xbf16>
    %162 = arith.truncf %160 : vector<8x8xf32> to vector<8x8xbf16>
    %cst_28 = arith.constant dense<0.000000e+00> : vector<8x8xf32>
    %163 = tpu.matmul %161, %162, %cst_28 {dimension_numbers = #tpu.dot_dimension_numbers<[1], [1], [0], [0], [0, 0, 1, 0], [], []>} : vector<8x8xbf16>, vector<8x8xbf16>, vector<8x8xf32> -> vector<8x8xf32>
    %cst_29 = arith.constant 0xFF800000 : f32
    %164 = vector.broadcast %cst_29 : f32 to vector<8x8xf32>
    %165 = arith.select %22, %163, %164 : vector<8x8xi1>, vector<8x8xf32>
    %cst_30 = arith.constant dense<0xFF800000> : vector<8xf32>
    %166 = vector.multi_reduction <maximumf>, %165, %cst_30 [1] : vector<8x8xf32> to vector<8xf32>
    %167 = vector.shape_cast %166 : vector<8xf32> to vector<8x1xf32>
    %168 = vector.broadcast %167 : vector<8x1xf32> to vector<8x8xf32>
    %169 = arith.subf %165, %168 : vector<8x8xf32>
    %170 = math.exp %169 : vector<8x8xf32>
    %cst_31 = arith.constant dense<0.000000e+00> : vector<8xf32>
    %171 = vector.multi_reduction <add>, %170, %cst_31 [1] : vector<8x8xf32> to vector<8xf32>
    %172 = vector.shape_cast %171 : vector<8xf32> to vector<8x1xf32>
    %173 = tpu.reciprocal %172 {approx = true} : vector<8x1xf32> -> vector<8x1xf32>
    %174 = vector.broadcast %173 : vector<8x1xf32> to vector<8x8xf32>
    %175 = arith.mulf %170, %174 : vector<8x8xf32>
    %176 = arith.truncf %175 : vector<8x8xf32> to vector<8x8xbf16>
    %177 = arith.truncf %142 : vector<8x8xf32> to vector<8x8xbf16>
    %cst_32 = arith.constant dense<0.000000e+00> : vector<8x8xf32>
    %178 = tpu.matmul %176, %177, %cst_32 {dimension_numbers = #tpu.dot_dimension_numbers<[1], [0], [0], [1], [0, 0, 1, 1], [], []>} : vector<8x8xbf16>, vector<8x8xbf16>, vector<8x8xf32> -> vector<8x8xf32>
    %179 = tpu.concatenate %61, %100, %139, %178 in 1 : vector<8x8xf32>, vector<8x8xf32>, vector<8x8xf32>, vector<8x8xf32> -> vector<8x32xf32>
    %180 = arith.truncf %179 : vector<8x32xf32> to vector<8x32xbf16>
    %c0_33 = arith.constant 0 : index
    %c0_34 = arith.constant 0 : index
    %181 = vector.load %arg4[%c0_33, %c0_34] : memref<32x32xbf16, #tpu.memory_space<vmem>>, vector<32x32xbf16>
    %cst_35 = arith.constant dense<0.000000e+00> : vector<8x32xf32>
    %182 = tpu.matmul %180, %181, %cst_35 {dimension_numbers = #tpu.dot_dimension_numbers<[1], [1], [0], [0], [0, 0, 1, 0], [], []>} : vector<8x32xbf16>, vector<32x32xbf16>, vector<8x32xf32> -> vector<8x32xf32>
    %183 = arith.addf %1, %182 : vector<8x32xf32>
    %c0_36 = arith.constant 0 : index
    %c0_37 = arith.constant 0 : index
    %c0_38 = arith.constant 0 : index
    %184 = vector.load %arg7[%c0_36, %c0_37, %c0_38] : memref<1x8x32xf32, #tpu.memory_space<vmem>>, vector<1x8x32xf32>
    %185 = vector.shape_cast %184 : vector<1x8x32xf32> to vector<8x32xf32>
    %186 = vector.shape_cast %183 : vector<8x32xf32> to vector<1x8x32xf32>
    tpu.vector_store %arg7[%c0_36, %c0_37, %c0_38], %186 {strides = array<i32>} : memref<1x8x32xf32, #tpu.memory_space<vmem>>, vector<1x8x32xf32>,
    return
  }
  func.func @transform_0(%arg0: i32) -> (i32, i32, i32) {
    %c0_i32 = arith.constant 0 : i32
    %c0_i32_0 = arith.constant 0 : i32
    %c0_i32_1 = arith.constant 0 : i32
    return %arg0, %c0_i32, %c0_i32_0 : i32, i32, i32
  }
  func.func @transform_1(%arg0: i32) -> (i32, i32) {
    %c0_i32 = arith.constant 0 : i32
    %c0_i32_0 = arith.constant 0 : i32
    %c0_i32_1 = arith.constant 0 : i32
    return %c0_i32, %c0_i32_0 : i32, i32
  }
  func.func @transform_2(%arg0: i32) -> (i32, i32) {
    %c0_i32 = arith.constant 0 : i32
    %c0_i32_0 = arith.constant 0 : i32
    %c0_i32_1 = arith.constant 0 : i32
    return %c0_i32, %c0_i32_0 : i32, i32
  }
  func.func @transform_3(%arg0: i32) -> (i32, i32) {
    %c0_i32 = arith.constant 0 : i32
    %c0_i32_0 = arith.constant 0 : i32
    %c0_i32_1 = arith.constant 0 : i32
    return %c0_i32, %c0_i32_0 : i32, i32
  }
  func.func @transform_4(%arg0: i32) -> (i32, i32) {
    %c0_i32 = arith.constant 0 : i32
    %c0_i32_0 = arith.constant 0 : i32
    %c0_i32_1 = arith.constant 0 : i32
    return %c0_i32, %c0_i32_0 : i32, i32
  }
  func.func @transform_5(%arg0: i32) -> (i32, i32) {
    %c0_i32 = arith.constant 0 : i32
    %c0_i32_0 = arith.constant 0 : i32
    %c0_i32_1 = arith.constant 0 : i32
    return %c0_i32, %c0_i32_0 : i32, i32
  }
  func.func @transform_6(%arg0: i32) -> (i32, i32, i32) {
    %c0_i32 = arith.constant 0 : i32
    %c0_i32_0 = arith.constant 0 : i32
    %c0_i32_1 = arith.constant 0 : i32
    return %arg0, %c0_i32, %c0_i32_0 : i32, i32, i32
  }
}

module attributes {stable_mosaic.version = 11 : i64} {
  func.func @_ffn_block_kernel(%arg0: i32, %arg1: memref<16x32xf32, #tpu.memory_space<vmem>>, %arg2: memref<1x32xf32, #tpu.memory_space<vmem>>, %arg3: memref<256x32xbf16, #tpu.memory_space<vmem>>, %arg4: memref<32x128xbf16, #tpu.memory_space<vmem>>, %arg5: memref<16x32xf32, #tpu.memory_space<vmem>>) attributes {dimension_semantics = [#tpu.dimension_semantics<parallel>], iteration_bounds = array<i64: 1>, scalar_prefetch = 0 : i64, scratch_operands = 0 : i64, tpu.core_type = #tpu.core_type<tc>, window_params = [{transform_indices = @transform_0, window_bounds = array<i64: 16, 32>}, {pipeline_mode = #tpu.pipeline_mode<synchronous>, transform_indices = @transform_1, window_bounds = array<i64: 1, 32>}, {pipeline_mode = #tpu.pipeline_mode<synchronous>, transform_indices = @transform_2, window_bounds = array<i64: 256, 32>}, {pipeline_mode = #tpu.pipeline_mode<synchronous>, transform_indices = @transform_3, window_bounds = array<i64: 32, 128>}, {transform_indices = @transform_4, window_bounds = array<i64: 16, 32>}]} {
    %c0 = arith.constant 0 : index
    %c0_0 = arith.constant 0 : index
    %0 = vector.load %arg1[%c0, %c0_0] : memref<16x32xf32, #tpu.memory_space<vmem>>, vector<16x32xf32>
    %1 = arith.mulf %0, %0 : vector<16x32xf32>
    %cst = arith.constant dense<0.000000e+00> : vector<16xf32>
    %2 = vector.multi_reduction <add>, %1, %cst [1] : vector<16x32xf32> to vector<16xf32>
    %3 = vector.shape_cast %2 : vector<16xf32> to vector<16x1xf32>
    %cst_1 = arith.constant 3.200000e+01 : f32
    %4 = vector.broadcast %cst_1 : f32 to vector<16x1xf32>
    %5 = arith.divf %3, %4 : vector<16x1xf32>
    %cst_2 = arith.constant 9.99999974E-6 : f32
    %6 = vector.broadcast %cst_2 : f32 to vector<16x1xf32>
    %7 = arith.addf %5, %6 : vector<16x1xf32>
    %8 = math.rsqrt %7 : vector<16x1xf32>
    %9 = vector.broadcast %8 : vector<16x1xf32> to vector<16x32xf32>
    %10 = arith.mulf %0, %9 : vector<16x32xf32>
    %c0_3 = arith.constant 0 : index
    %c0_4 = arith.constant 0 : index
    %11 = vector.load %arg2[%c0_3, %c0_4] : memref<1x32xf32, #tpu.memory_space<vmem>>, vector<1x32xf32>
    %12 = vector.broadcast %11 : vector<1x32xf32> to vector<16x32xf32>
    %13 = arith.mulf %10, %12 : vector<16x32xf32>
    %14 = arith.truncf %13 : vector<16x32xf32> to vector<16x32xbf16>
    %c0_5 = arith.constant 0 : index
    %c0_6 = arith.constant 0 : index
    %15 = vector.load %arg3[%c0_5, %c0_6] : memref<256x32xbf16, #tpu.memory_space<vmem>>, vector<256x32xbf16>
    %cst_7 = arith.constant dense<0.000000e+00> : vector<16x256xf32>
    %16 = tpu.matmul %14, %15, %cst_7 {dimension_numbers = #tpu.dot_dimension_numbers<[1], [1], [0], [0], [0, 0, 1, 0], [], []>} : vector<16x32xbf16>, vector<256x32xbf16>, vector<16x256xf32> -> vector<16x256xf32>
    %17 = vector.extract_strided_slice %16 {offsets = [0, 0], sizes = [16, 128], strides = [1, 1]} : vector<16x256xf32> to vector<16x128xf32>
    %18 = vector.extract_strided_slice %16 {offsets = [0, 128], sizes = [16, 128], strides = [1, 1]} : vector<16x256xf32> to vector<16x128xf32>
    %19 = arith.negf %17 : vector<16x128xf32>
    %20 = math.exp %19 : vector<16x128xf32>
    %cst_8 = arith.constant 1.000000e+00 : f32
    %21 = vector.broadcast %cst_8 : f32 to vector<16x128xf32>
    %22 = arith.addf %21, %20 : vector<16x128xf32>
    %23 = arith.divf %21, %22 : vector<16x128xf32>
    %24 = arith.mulf %17, %23 : vector<16x128xf32>
    %25 = arith.mulf %24, %18 : vector<16x128xf32>
    %26 = arith.truncf %25 : vector<16x128xf32> to vector<16x128xbf16>
    %c0_9 = arith.constant 0 : index
    %c0_10 = arith.constant 0 : index
    %27 = vector.load %arg4[%c0_9, %c0_10] : memref<32x128xbf16, #tpu.memory_space<vmem>>, vector<32x128xbf16>
    %cst_11 = arith.constant dense<0.000000e+00> : vector<16x32xf32>
    %28 = tpu.matmul %26, %27, %cst_11 {dimension_numbers = #tpu.dot_dimension_numbers<[1], [1], [0], [0], [0, 0, 1, 0], [], []>} : vector<16x128xbf16>, vector<32x128xbf16>, vector<16x32xf32> -> vector<16x32xf32>
    %29 = arith.addf %0, %28 : vector<16x32xf32>
    %c0_12 = arith.constant 0 : index
    %c0_13 = arith.constant 0 : index
    %30 = vector.load %arg5[%c0_12, %c0_13] : memref<16x32xf32, #tpu.memory_space<vmem>>, vector<16x32xf32>
    tpu.vector_store %arg5[%c0_12, %c0_13], %29 {strides = array<i32>} : memref<16x32xf32, #tpu.memory_space<vmem>>, vector<16x32xf32>,
    return
  }
  func.func @transform_0(%arg0: i32) -> (i32, i32) {
    %c0_i32 = arith.constant 0 : i32
    %c0_i32_0 = arith.constant 0 : i32
    return %arg0, %c0_i32 : i32, i32
  }
  func.func @transform_1(%arg0: i32) -> (i32, i32) {
    %c0_i32 = arith.constant 0 : i32
    %c0_i32_0 = arith.constant 0 : i32
    %c0_i32_1 = arith.constant 0 : i32
    return %c0_i32, %c0_i32_0 : i32, i32
  }
  func.func @transform_2(%arg0: i32) -> (i32, i32) {
    %c0_i32 = arith.constant 0 : i32
    %c0_i32_0 = arith.constant 0 : i32
    %c0_i32_1 = arith.constant 0 : i32
    return %c0_i32, %c0_i32_0 : i32, i32
  }
  func.func @transform_3(%arg0: i32) -> (i32, i32) {
    %c0_i32 = arith.constant 0 : i32
    %c0_i32_0 = arith.constant 0 : i32
    %c0_i32_1 = arith.constant 0 : i32
    return %c0_i32, %c0_i32_0 : i32, i32
  }
  func.func @transform_4(%arg0: i32) -> (i32, i32) {
    %c0_i32 = arith.constant 0 : i32
    %c0_i32_0 = arith.constant 0 : i32
    return %arg0, %c0_i32 : i32, i32
  }
}

</mosaic_0001>

<bundles_post_ra>
// kernel: transformer_block.3
= control target key start
LH: loop header
LB: loop body
LE: loop exit
PB: predicated region body
PF: predicated region fallthrough
CT: control target
= control target key end

     0   :  { %vm23_vm0 = vcmask 261120   ;;  %s606_s0 = inlined_call_operand.vmem [shape: f32[16,32], index: 0, kind: input, shape index: {}]   ;;  %s607_s1 = inlined_call_operand.vmem [shape: f32[1,32], index: 1, kind: input, shape index: {}]   ;;  %s608_s2 = inlined_call_operand.vmem [shape: bf16[256,32], index: 2, kind: input, shape index: {}]   ;;  %s609_s3 = inlined_call_operand.vmem [shape: bf16[32,128], index: 3, kind: input, shape index: {}]   ;;  %s610_s4 = inlined_call_operand.hbm [shape: f32[16,32], index: 4, kind: output, shape index: {}]  }
   0x1   :  { %v500_v0 = vld [vmem:[%s606_s0] sm:$0xff]  ;;  %v505_v1 = vld [vmem:[%s606_s0 + $0x8] sm:$0xff]  ;;  %v417_v12 = vld [vmem:[%s608_s2 + $0x50] sm:$0xff]  }
   0x2   :  { %v21_v2 = vmul.f32 %v500_v0, %v500_v0  ;;  %v22_v3 = vmul.f32 %v505_v1, %v505_v1  ;;  %v413_v4 = vld [vmem:[%s608_s2 + $0x40] sm:$0xff]   ;;  %v415_v7 = vld [vmem:[%s608_s2 + $0x48] sm:$0xff]   ;;  %v418_v13 = vld [vmem:[%s608_s2 + $0x10] sm:$0xff]  }
   0x3   :  { %v414_v5 = vld [vmem:[%s608_s2] sm:$0xff]   ;;  %400 = vmatprep.subr.msk.bf16.mxu0 %vm23_vm0, %v413_v4  ;;  %v416_v10 = vld [vmem:[%s608_s2 + $0x8] sm:$0xff]  }
   0x4   :  { %v24_v6 = vsel %vm23_vm0, %v21_v2, 0.0  ;;  %v165_v8 = vsel %vm23_vm0, %v414_v5, 0  ;;  %v27_v9 = vsel %vm23_vm0, %v22_v3, 0.0  ;;  %v168_v11 = vsel %vm23_vm0, %v416_v10, 0 }
   0x5   :  { %25 = vadd.xlane.f32.xlu0 %v24_v6  ;;  %372 = vmatpush3.bf16.xpose.msra.mxu0 %v165_v8 }
   0x6   :  { %401 = vmatprep.subr.msk.bf16.mxu0 %vm23_vm0, %v415_v7 }
   0x9   :  { %28 = vadd.xlane.f32.xlu0 %v27_v9 }
   0xd   :  { %374 = vmatpush3.bf16.xpose.msra.mxu0 %v168_v11 }
   0xe   :  { %402 = vmatprep.subr.msk.bf16.mxu0 %vm23_vm0, %v417_v12 }
   0xf   :  { %9 = vsyncpa [#allocation3], 0  ;;  %v171_v14 = vsel %vm23_vm0, %v418_v13, 0  ;;  %v419_v15 = vld [vmem:[%s608_s2 + $0x58] sm:$0xff]   ;;  %v421_v18 = vld [vmem:[%s608_s2 + $0x60] sm:$0xff]   ;;  %v467_v45 = vmov 0.0  }
  0x10   :  { %v420_v16 = vld [vmem:[%s608_s2 + $0x18] sm:$0xff]   ;;  %v422_v19 = vld [vmem:[%s608_s2 + $0x20] sm:$0xff]   ;;  %v423_v21 = vld [vmem:[%s608_s2 + $0x68] sm:$0xff]   ;;  %392 = vmatprep.subr.bf16.mxu1 %v467_v45  ;;  %vm468_vm1 = vmmov 0  }
  0x11   :  { %v174_v17 = vsel %vm23_vm0, %v420_v16, 0  ;;  %v177_v20 = vsel %vm23_vm0, %v422_v19, 0  ;;  %v424_v22 = vld [vmem:[%s608_s2 + $0x28] sm:$0xff]   ;;  %v425_v24 = vld [vmem:[%s608_s2 + $0x70] sm:$0xff]   ;;  %v427_v27 = vld [vmem:[%s608_s2 + $0x78] sm:$0xff]   ;;  %396 = vmatprep.mubr.msk.bf16.mxu1 %vm468_vm1, %v467_v45 }
  0x12   :  { %v180_v23 = vsel %vm23_vm0, %v424_v22, 0  ;;  %v426_v25 = vld [vmem:[%s608_s2 + $0x30] sm:$0xff]   ;;  %v428_v28 = vld [vmem:[%s608_s2 + $0x38] sm:$0xff]   ;;  %v349_v39 = vld [vmem:[%s607_s1] ss:$0 sm:$0xff]  ;;  %s469_s1 = smov [#allocation2]  }
  0x13   :  { %v183_v26 = vsel %vm23_vm0, %v426_v25, 0  ;;  %v186_v29 = vsel %vm23_vm0, %v428_v28, 0  ;;  %v429_v44 = vld [vmem:[%s609_s3] sm:$0xff]   ;;  %v430_v46 = vld [vmem:[%s609_s3 + $0x8] sm:$0xff]   ;;  %s338_s3 = sshll.u32 %s469_s1, 4  ;;  %s339_s3 = int_to_ptr.vmem [resolvable:$true] %s338_s3 }
  0x14   :  { %393 = vmatpush3.bf16.xpose.msra.mxu1 %v429_v44  ;;  %s443_s28 = scalar_lea.vmem %s339_s3, 256  ;;  %p448_p1 = scmp.lt.s32.totalorder %s339_s3, %s339_s3 }
  0x15   :  { %376 = vmatpush3.bf16.xpose.msra.mxu0 %v171_v14  ;;  %394 = vmatprep.subr.bf16.mxu1 %v467_v45  ;;  %p444_p0 = scmp.ne.s32.totalorder %s339_s3, %s443_s28  ;;  %p449_p2 = scmp.lt.s32.totalorder %s443_s28, %s443_s28 }
  0x16   :  { %403 = vmatprep.subr.msk.bf16.mxu0 %vm23_vm0, %v419_v15 }
  0x17   :  { %p450_p3 = por %p449_p2, %p448_p1 }
  0x19   :  { %p451_p4 = pnand %p450_p3, %p444_p0 }
  0x1c   :  { %395 = vmatpush3.bf16.xpose.msra.mxu1 %v430_v46 }
  0x1d   :  { %378 = vmatpush3.bf16.xpose.msra.mxu0 %v174_v17 }
  0x1e   :  { %404 = vmatprep.subr.msk.bf16.mxu0 %vm23_vm0, %v421_v18 }
  0x25   :  { %380 = vmatpush3.bf16.xpose.msra.mxu0 %v177_v20 }
  0x26   :  { %405 = vmatprep.subr.msk.bf16.mxu0 %vm23_vm0, %v423_v21 }
  0x2d   :  { %382 = vmatpush3.bf16.xpose.msra.mxu0 %v180_v23 }
  0x2e   :  { %406 = vmatprep.subr.msk.bf16.mxu0 %vm23_vm0, %v425_v24 }
  0x35   :  { %384 = vmatpush3.bf16.xpose.msra.mxu0 %v183_v26 }
  0x36   :  { %407 = vmatprep.subr.msk.bf16.mxu0 %vm23_vm0, %v427_v27 }
  0x3d   :  { %386 = vmatpush3.bf16.xpose.msra.mxu0 %v186_v29 }
  0x92   :  { %v26_v30 = vpop.xlane.xlu0 %25 }
  0x93   :  { %v31_v31 = vmul.f32 0.03125, %v26_v30 }
  0x95   :  { %v33_v32 = vadd.f32 1e-05, %v31_v31 }
  0x96   :  { %v29_v33 = vpop.xlane.xlu0 %28 }
  0x97   :  { %431 = vrsqrt.f32 %v33_v32  ;;  %v32_v34 = vmul.f32 0.03125, %v29_v33 }
  0x99   :  { %v34_v35 = vadd.f32 1e-05, %v32_v34 }
  0x9b   :  { %433 = vrsqrt.f32 %v34_v35 }
  0xa1   :  { %v432_v36 = vpop.eup %431 }
  0xa2   :  { %v37_v37 = vmul.f32 %v432_v36, %v500_v0 }
  0xa4   :  { %v46_v41 = vmul.f32 %v349_v39, %v37_v37 }
  0xa5   :  { %v434_v38 = vpop.eup %433 }
  0xa6   :  { %v38_v40 = vmul.f32 %v434_v38, %v505_v1 }
  0xa8   :  { %v47_v42 = vmul.f32 %v349_v39, %v38_v40 }
  0xaa   :  { %v48_v43 = vpack.c.bf16 %v47_v42, %v46_v41 }
  0xac   :  { %387 = vmatprep.mubr.msk.bf16.mxu0 %vm23_vm0, %v48_v43 }
  0xad   :  { %388 = vmatmul.mubr.msk.bf16.vlgmr.msra.gmra.mrb[0].mxu0 %vm23_vm0, %v48_v43 }
 0x180   :  { %v246_v47 = vpop.f32.mrb[0].mxu0 }
 0x181   :  { %v367_v48 = vmul.f32 -1.442695, %v246_v47  ;;  %v248_v49 = vpop.f32.mrb[1].mxu0 }
 0x182   :  { %v250_v50 = vpop.f32.mrb[2].mxu0 }
 0x183   :  { %435 = vpow2.f32 %v367_v48  ;;  %v368_v51 = vmul.f32 -1.442695, %v250_v50  ;;  %v252_v52 = vpop.f32.mrb[3].mxu0 }
 0x185   :  { %437 = vpow2.f32 %v368_v51 }
 0x18d   :  { %v436_v53 = vpop.eup %435 }
 0x18e   :  { %v261_v54 = vadd.f32 1.0, %v436_v53 }
 0x18f   :  { %v438_v55 = vpop.eup %437 }
 0x190   :  { %439 = vrcp.f32 %v261_v54  ;;  %v262_v56 = vadd.f32 1.0, %v438_v55 }
 0x192   :  { %441 = vrcp.f32 %v262_v56 }
 0x19a   :  { %v440_v57 = vpop.eup %439 }
 0x19b   :  { %v267_v58 = vmul.f32 %v440_v57, %v246_v47 }
 0x19c   :  { %v442_v59 = vpop.eup %441 }
 0x19d   :  { %v269_v60 = vmul.f32 %v267_v58, %v248_v49  ;;  %v268_v61 = vmul.f32 %v442_v59, %v250_v50 }
 0x19f   :  { %v270_v62 = vmul.f32 %v268_v61, %v252_v52 }
 0x1a1   :  { %v271_v63 = vpack.c.bf16 %v270_v62, %v269_v60 }
 0x1a3   :  { %397 = vmatmul.mubr.bf16.vlgmr.msra.gmra.mrb[0].mxu1 %v271_v63 }
 0x276   :  { %v322_v2 = vpop.f32.mrb[0].mxu1 }
 0x277   :  { %v329_v3 = vadd.f32 %v322_v2, %v500_v0  ;;  %v398_v4 = vpop.f32.mrb[1].mxu1 }
 0x278   :  { %v325_v5 = vpop.f32.mrb[2].mxu1 }
 0x279   :  { %331 = vst.msk [vmem:[#allocation2] sm:$0xff] %vm23_vm0, %v329_v3  ;;  %v330_v6 = vadd.f32 %v325_v5, %v505_v1  ;;  %v399_v7 = vpop.f32.mrb[3].mxu1 }
 0x27b   :  { %332 = vst.msk [vmem:[#allocation2 + $0x8] sm:$0xff] %vm23_vm0, %v330_v6 }
 0x27c   :  { %454 = shalt.err (!%p451_p4)
}
 0x27d   :  { %s455_s5 = scalar_lea.hbm %s610_s4, 256 }
 0x27e   :  { %p456_p5 = scmp.ne.s32.totalorder %s610_s4, %s455_s5  ;;  %p459_p6 = scmp.lt.u32.totalorder %s455_s5, %s610_s4 }
 0x280   :  { %p461_p7 = pnand %p459_p6, %p456_p5 }
 0x282   :  { %464 = shalt.err (!%p461_p7)
}
 0x283   :  { %s470_s10 = smov 128   ;;  %s471_s11 = smov 8  }
 0x284   :  { %344 = dma.vmem_to_hbm [thread:$0]  %s339_s3, 256, %s610_s4, [#allocation3], %s470_s10, %s470_s10, %s471_s11  }
 0x285   :  { %465 = dma.done.wait [#allocation3], 256  }
 0x286   :  { %466 = vsyncadd [#allocation3], 4294967040 }
 0x287   :  { %348 = vsyncpa [#allocation3], 1 }

// kernel: transformer_block.2
= control target key start
LH: loop header
LB: loop body
LE: loop exit
PB: predicated region body
PF: predicated region fallthrough
CT: control target
= control target key end

     0   :  { %s1513_s21 = smov 0   ;;  %s1799_s0 = inlined_call_operand.vmem [shape: f32[2,8,32], index: 0, kind: input, shape index: {}]   ;;  %s1800_s1 = inlined_call_operand.vmem [shape: f32[1,32], index: 1, kind: input, shape index: {}]   ;;  %s1801_s2 = inlined_call_operand.vmem [shape: bf16[96,32], index: 2, kind: input, shape index: {}]   ;;  %s1802_s3 = inlined_call_operand.vmem [shape: bf16[32,32], index: 3, kind: input, shape index: {}]   ;;  %s1803_s4 = inlined_call_operand.vmem [shape: f32[8,4], index: 4, kind: input, shape index: {}]   ;;  %s1804_s5 = inlined_call_operand.vmem [shape: f32[8,4], index: 5, kind: input, shape index: {}]   ;;  %s1805_s6 = inlined_call_operand.vmem [shape: f32[2,8,32], index: 6, kind: output, shape index: {}]  }
   0x1 LB: > { %s1223_s22 = sadd.s32 4294967295, %s1450_s21   ;;  %p1227_p0 = scmp.ge.s32.totalorder %s1450_s21, 1  ;;  %s1450_s21 = sphi %s1513_s21, %s16_s21  }
   0x2   : > { %p211_p1 = scmp.lt.s32.totalorder %s1450_s21, 3 }
   0x4   : > { %p212_p2 = pnand %p1227_p0, %p211_p1 }
   0x5   : > { %p239_p3 = scmp.lt.s32.totalorder (!%p212_p2), %s1223_s22, 1  ;;  %vm250_vm0 = vcmask (!%p212_p2), 261120   ;;  %v1418_v0 = vld [vmem:[%s1801_s2] sm:$0xff] (!%p212_p2)   ;;  %v1452_v1 = vmov (!%p212_p2), 0.0   ;;  %v1419_v3 = vld [vmem:[%s1801_s2 + $0x8] sm:$0xff] (!%p212_p2)   ;;  %v1420_v8 = vld [vmem:[%s1801_s2 + $0x10] sm:$0xff] (!%p212_p2)  }
   0x6   : > { %215 = sbr.rel (%p212_p2) target bundleno = 3333 (0xd05), region = 44  ;;  %1277 = vmatprep.subr.bf16.mxu0 (!%p212_p2), %v1452_v1  ;;  %1293 = vmatprep.subr.bf16.mxu1 (!%p212_p2), %v1452_v1  ;;  %v314_v2 = vsel (!%p212_p2), %vm250_vm0, %v1418_v0, 0  ;;  %v317_v6 = vsel (!%p212_p2), %vm250_vm0, %v1419_v3, 0  ;;  %v320_v9 = vsel (!%p212_p2), %vm250_vm0, %v1420_v8, 0  ;;  %v1421_v10 = vld [vmem:[%s1801_s2 + $0x18] sm:$0xff] (!%p212_p2)   ;;  %v1422_v12 = vld [vmem:[%s1801_s2 + $0x20] sm:$0xff] (!%p212_p2)  }
   0x7   : > { %1278 = vmatpush3.bf16.xpose.msra.mxu0 (!%p212_p2), %v314_v2  ;;  %v323_v11 = vsel (!%p212_p2), %vm250_vm0, %v1421_v10, 0  ;;  %vm1453_vm1 = vmmov (!%p212_p2), 0   ;;  %v326_v13 = vsel (!%p212_p2), %vm250_vm0, %v1422_v12, 0  ;;  %v1423_v14 = vld [vmem:[%s1801_s2 + $0x28] sm:$0xff] (!%p212_p2)   ;;  %v1573_v16 = vld [vmem:[%s1804_s5] sm:$0xff] (!%p212_p2)  ;;  %s1454_s17 = smov (!%p212_p2), 32  }
   0x8   : > { %1279 = vmatprep.subr.bf16.mxu0 (!%p212_p2), %v1452_v1  ;;  %1289 = vmatprep.mubr.msk.bf16.mxu0 (!%p212_p2), %vm1453_vm1, %v1452_v1  ;;  %v329_v15 = vsel (!%p212_p2), %vm250_vm0, %v1423_v14, 0  ;;  %s1455_s18 = smov (!%p212_p2), 36   ;;  %v1580_v17 = vld [vmem:[%s1803_s4] sm:$0xff] (!%p212_p2)  ;;  %s1456_s23 = smov (!%p212_p2), 4   ;;  %vm400_vm2 = vcmask (!%p212_p2), 31744   ;;  %vm439_vm3 = vcmask (!%p212_p2), 64512  }
   0x9   : > { %1295 = vmatprep.mubr.msk.bf16.mxu1 (!%p212_p2), %vm1453_vm1, %v1452_v1  ;;  %419 = vrot.lane.b32.xlu1 (!%p212_p2), %v1573_v16, %s1454_s17  ;;  %v1230_v22 = vld [vmem:[%s1800_s1] ss:$0 sm:$0xff] (!%p212_p2)  ;;  %s1457_s27 = smov (!%p212_p2), 124   ;;  %s1458_s28 = smov (!%p212_p2), 40   ;;  %vm506_vm5 = vcmask (!%p212_p2), 1043456   ;;  %vm1100_vm6 = vcmask (!%p212_p2), 130048  }
   0xa   : > { %s1459_s29 = smov (!%p212_p2), 12   ;;  %s1461_s7 = smov (!%p212_p2), 44   ;;  %vm1102_vm7 = vcmask (!%p212_p2), 195584  }
   0xb   : > { %s1462_s8 = smov (!%p212_p2), 96   ;;  %s1463_s9 = smov (!%p212_p2), 64  }
   0xc   : > { %s1464_s10 = smov (!%p212_p2), 88   ;;  %s1465_s11 = smov (!%p212_p2), 120  }
   0xd   : > { %s1807_s22 = smov (!%p239_p3, %s1223_s22), 1  ;;  %402 = vrot.lane.b32.xlu1 %v1580_v17, %s1454_s17  ;;  %s1466_s12 = smov 52  }
   0xe   : > { %s1228_s25 = sshll.u32 %s1807_s22, 3  ;;  %s1467_s13 = smov 48  }
   0xf   : > { %s242_s30 = scalar_lea.vmem %s1799_s0, %s1228_s25  ;;  %1280 = vmatpush3.bf16.xpose.msra.mxu0 %v317_v6  ;;  %s1468_s14 = smov 20  }
  0x10   : > { %v1539_v4 = vld [vmem:[%s242_s30] sm:$0xff]  ;;  %1281 = vmatprep.subr.bf16.mxu0 %v1452_v1  ;;  %s1460_s30 = smov 8   ;;  %s1469_s15 = smov 16  }
  0x11   : > { %v249_v5 = vmul.f32 %v1539_v4, %v1539_v4  ;;  %415 = vrot.lane.b32.xlu1 %v1580_v17, %s1455_s18  ;;  %s1470_s16 = smov 56   ;;  %s1471_s17 = smov 80  }
  0x12   : > { %s1473_s19 = smov 60   ;;  %s1474_s20 = smov 28  }
  0x13   : > { %v251_v7 = vsel %vm250_vm0, %v249_v5, 0.0  ;;  %v373_v5 = vlaneseq  ;;  %s1475_s24 = smov 24   ;;  %s1477_s26 = smov 104  }
  0x14   : > { %252 = vadd.xlane.f32.xlu0 %v251_v7 }
  0x15   : > { %v1638_v6 = vshrl.u32 %v373_v5, 7  ;;  %v1640_v7 = vand.u32 127, %v373_v5 }
  0x17   : > { %1282 = vmatpush3.bf16.xpose.msra.mxu0 %v320_v9  ;;  %vm377_vm4 = vcmp.le.s32.totalorder %v1640_v7, %v1638_v6 }
  0x18   : > { %1283 = vmatprep.subr.bf16.mxu0 %v1452_v1 }
  0x1f   : > { %1284 = vmatpush3.bf16.xpose.msra.mxu0 %v323_v11 }
  0x20   : > { %1285 = vmatprep.subr.bf16.mxu0 %v1452_v1 }
  0x27   : > { %1286 = vmatpush3.bf16.xpose.msra.mxu0 %v326_v13 }
  0x28   : > { %1287 = vmatprep.subr.bf16.mxu0 %v1452_v1 }
  0x2a   : > { %406 = vrot.lane.b32.xlu0 %v1573_v16, %s1455_s18  ;;  %s1472_s18 = smov 112  }
  0x2e   : > { %390 = vrot.lane.b32.xlu0 %v1580_v17, %s1456_s23 }
  0x2f   : > { %1288 = vmatpush3.bf16.xpose.msra.mxu0 %v329_v15 }
  0x30   : > { %1341 = vmatprep.subr.bf16.mxu0 %v1452_v1 }
  0x7b   : > { %v420_v33 = vpop.permute.xlu1 %419 }
  0x7f   : > { %v403_v35 = vpop.permute.xlu1 %402 }
  0x83   : > { %v416_v36 = vpop.permute.xlu1 %415 }
  0xa1   : > { %v253_v18 = vpop.xlane.xlu0 %252 }
  0xa2   : > { %v255_v19 = vmul.f32 0.03125, %v253_v18 }
  0xa4   : > { %v256_v20 = vadd.f32 1e-05, %v255_v19 }
  0xa5   : > { %v407_v26 = vpop.permute.xlu0 %406 }
  0xa6   : > { %1426 = vrsqrt.f32 %v256_v20 }
  0xa9   : > { %v391_v46 = vpop.permute.xlu0 %390 }
  0xb0   : > { %v1427_v21 = vpop.eup %1426 }
  0xb1   : > { %v258_v23 = vmul.f32 %v1427_v21, %v1539_v4 }
  0xb3   : > { %v266_v24 = vmul.f32 %v1230_v22, %v258_v23 }
  0xb5   : > { %v267_v25 = vpack.c.bf16 %v266_v24, %v266_v24 }
  0xb7   : > { %1290 = vmatmul.mubr.msk.bf16.vlgmr.msra.gmra.mrb[0].mxu0 %vm250_vm0, %v267_v25 }
  0xb8   : > { %1345 = vmatprep.mubr.msk.bf16.mxu0 %vm1453_vm1, %v1452_v1 }
 0x18a   : > { %v1593_v27 = vpop.f32.mrb[0].mxu0 }
 0x18b   : > { %v1291_v28 = vpop.f32.mrb[1].mxu0  ;;  %v394_v29 = vmul.f32 %v1573_v16, %v1593_v27  ;;  %v409_v30 = vmul.f32 %v407_v26, %v1593_v27  ;;  %v422_v34 = vmul.f32 %v420_v33, %v1593_v27  ;;  %v405_v38 = vmul.f32 %v403_v35, %v1593_v27 }
 0x18c   : > { %v368_v31 = vpop.f32.mrb[2].mxu0  ;;  %v418_v39 = vmul.f32 %v416_v36, %v1593_v27  ;;  %v378_v50 = vmul.f32 %v1580_v17, %v1593_v27  ;;  %v393_v55 = vmul.f32 %v391_v46, %v1593_v27  ;;  %v1654_v25 = vpack.c.bf16 %v1593_v27, %v1593_v27 }
 0x18d   : > { %396 = vrot.lane.b32.xlu0 %v394_v29, %s1456_s23  ;;  %v1292_v32 = vpop.f32.mrb[3].mxu0  ;;  %411 = vrot.lane.b32.xlu1 %v409_v30, %s1457_s27 }
 0x191   : > { %602 = vrot.lane.b32.xlu0 %v1573_v16, %s1458_s28  ;;  %424 = vrot.lane.b32.xlu1 %v422_v34, %s1456_s23 }
 0x195   : > { %554 = vrot.lane.b32.xlu0 %v1573_v16, %s1459_s29  ;;  %380 = vrot.lane.b32.xlu1 %v1573_v16, %s1456_s23 }
 0x199   : > { %567 = vrot.lane.b32.xlu0 %v1573_v16, %s1460_s30 }
 0x19d   : > { %585 = vrot.lane.b32.xlu0 %v1580_v17, %s1458_s28 }
 0x1a1   : > { %598 = vrot.lane.b32.xlu0 %v1580_v17, %s1461_s7 }
 0x1ff   : > { %v412_v37 = vpop.permute.xlu1 %411  ;;  %v397_v52 = vpop.permute.xlu0 %396 }
 0x200   : > { %v414_v41 = vsub.f32 %v405_v38, %v412_v37  ;;  %v399_v58 = vadd.f32 %v397_v52, %v393_v55 }
 0x203   : > { %v425_v40 = vpop.permute.xlu1 %424  ;;  %v603_v62 = vpop.permute.xlu0 %602 }
 0x204   : > { %v427_v42 = vadd.f32 %v425_v40, %v418_v39  ;;  %v605_v0 = vmul.f32 %v603_v62, %v1593_v27 }
 0x206   : > { %v1383_v43 = vpack.i.bf16 %v427_v42, %v414_v41 }
 0x207   : > { %v381_v44 = vpop.permute.xlu1 %380  ;;  %v555_v2 = vpop.permute.xlu0 %554 }
 0x208   : > { %1384 = vrot.lane.b32.xlu1 %v1383_v43, %s1462_s8  ;;  %v383_v45 = vmul.f32 %v381_v44, %v1593_v27  ;;  %v557_v3 = vmul.f32 %v555_v2, %v1593_v27 }
 0x20b   : > { %v568_v8 = vpop.permute.xlu0 %567 }
 0x20c   : > { %385 = vrot.lane.b32.xlu1 %v383_v45, %s1457_s27  ;;  %v570_v20 = vmul.f32 %v568_v8, %v1593_v27 }
 0x20f   : > { %v586_v14 = vpop.permute.xlu0 %585 }
 0x210   : > { %589 = vrot.lane.b32.xlu1 %v1573_v16, %s1461_s7  ;;  %v588_v23 = vmul.f32 %v586_v14, %v1593_v27 }
 0x213   : > { %v599_v18 = vpop.permute.xlu0 %598 }
 0x214   : > { %v601_v22 = vmul.f32 %v599_v18, %v1593_v27 }
 0x27a   : > { %v1385_v47 = vpop.permute.xlu1 %1384 }
 0x27b   : > { %v1387_v48 = vunpack.i.h.bf16 %v1385_v47  ;;  %v1386_v49 = vunpack.i.l.bf16 %v1385_v47 }
 0x27d   : > { %v436_v51 = vsel %vm400_vm2, %v1386_v49, %v1387_v48 }
 0x27e   : > { %v386_v53 = vpop.permute.xlu1 %385  ;;  %v438_v54 = vpack.c.bf16 %v436_v51, %v436_v51 }
 0x27f   : > { %v388_v56 = vsub.f32 %v378_v50, %v386_v53 }
 0x280   : > { %v444_v57 = vsel %vm439_vm3, %v438_v54, 0 }
 0x281   : > { %1294 = vmatpush3.bf16.xpose.msra.mxu1 %v444_v57  ;;  %v401_v60 = vsel %vm400_vm2, %v388_v56, %v399_v58 }
 0x282   : > { %v590_v59 = vpop.permute.xlu1 %589  ;;  %1299 = vmatprep.subr.bf16.mxu1 %v1452_v1  ;;  %v437_v63 = vpack.c.bf16 %v401_v60, %v401_v60 }
 0x283   : > { %v592_v61 = vmul.f32 %v590_v59, %v1593_v27 }
 0x285   : > { %594 = vrot.lane.b32.xlu0 %v592_v61, %s1457_s27 }
 0x288   : > { %1296 = vmatmul.mubr.msk.bf16.vlgmr.msra.gmra.mrb[0].mxu1 %vm439_vm3, %v437_v63 }
 0x289   : > { %607 = vrot.lane.b32.xlu0 %v605_v0, %s1456_s23  ;;  %1301 = vmatprep.mubr.msk.bf16.mxu1 %vm1453_vm1, %v1452_v1 }
 0x28d   : > { %550 = vrot.lane.b32.xlu0 %v1580_v17, %s1460_s30 }
 0x291   : > { %563 = vrot.lane.b32.xlu0 %v1580_v17, %s1459_s29 }
 0x295   : > { %559 = vrot.lane.b32.xlu0 %v557_v3, %s1457_s27 }
 0x2f7   : > { %v595_v19 = vpop.permute.xlu0 %594 }
 0x2f8   : > { %v597_v26 = vsub.f32 %v588_v23, %v595_v19 }
 0x2fb   : > { %v608_v21 = vpop.permute.xlu0 %607 }
 0x2fc   : > { %v610_v24 = vadd.f32 %v608_v21, %v601_v22 }
 0x2fe   : > { %v1388_v28 = vpack.i.bf16 %v610_v24, %v597_v26 }
 0x2ff   : > { %v551_v29 = vpop.permute.xlu0 %550 }
 0x300   : > { %v553_v34 = vmul.f32 %v551_v29, %v1593_v27 }
 0x303   : > { %v564_v30 = vpop.permute.xlu0 %563 }
 0x304   : > { %v566_v35 = vmul.f32 %v564_v30, %v1593_v27 }
 0x307   : > { %v560_v33 = vpop.permute.xlu0 %559 }
 0x308   : > { %v562_v38 = vsub.f32 %v553_v34, %v560_v33 }
 0x35b   : > { %v480_v9 = vpop.f32.mrb[0].mxu1 }
 0x35c   : > { %v486_v10 = vsel %vm377_vm4, %v480_v9, -inf  ;;  %v1297_v11 = vpop.f32.mrb[1].mxu1 }
 0x35d   : > { %v483_v12 = vpop.f32.mrb[2].mxu1  ;;  %v487_v13 = vsel %vm439_vm3, %v486_v10, -inf }
 0x35e   : > { %488 = vmax.xlane.f32.xlu1 %v487_v13  ;;  %v1298_v15 = vpop.f32.mrb[3].mxu1 }
 0x36f   : > { %572 = vrot.lane.b32.xlu1 %v570_v20, %s1456_s23 }
 0x373   : > { %501 = vrot.lane.b32.xlu1 %v1654_v25, %s1463_s9  ;;  %s246_s9 = scalar_lea.vmem %s1805_s6, %s1228_s25 }
 0x377   : > { %1389 = vrot.lane.b32.xlu1 %v1388_v28, %s1464_s10 }
 0x3eb   : > { %v489_v31 = vpop.xlane.xlu1 %488 }
 0x3ec   : > { %v490_v32 = vsub.f32 %v486_v10, %v489_v31 }
 0x3ee   : > { %v491_v36 = vmul.f32 1.442695, %v490_v32 }
 0x3ef   : > { %v573_v37 = vpop.permute.xlu1 %572 }
 0x3f0   : > { %1428 = vpow2.f32 %v491_v36  ;;  %v575_v39 = vadd.f32 %v573_v37, %v566_v35 }
 0x3f2   : > { %v1393_v40 = vpack.i.bf16 %v575_v39, %v562_v38 }
 0x3f3   : > { %v502_v41 = vpop.permute.xlu1 %501 }
 0x3f4   : > { %v508_v42 = vsel %vm506_vm5, %v502_v41, 0  ;;  %1394 = vrot.lane.b32.xlu1 %v1393_v40, %s1465_s11 }
 0x3f5   : > { %1300 = vmatpush3.bf16.msra.mxu1 %v508_v42 }
 0x3f6   : > { %1305 = vmatprep.subr.bf16.mxu1 %v1452_v1 }
 0x3f7   : > { %v1390_v46 = vpop.permute.xlu1 %1389 }
 0x3f8   : > { %768 = vrot.lane.b32.xlu1 %v1573_v16, %s1466_s12  ;;  %v1392_v48 = vunpack.i.h.bf16 %v1390_v46  ;;  %v1391_v49 = vunpack.i.l.bf16 %v1390_v46 }
 0x3fa   : > { %v1429_v43 = vpop.eup %1428  ;;  %v619_v51 = vsel %vm400_vm2, %v1391_v49, %v1392_v48 }
 0x3fb   : > { %v493_v44 = vsel %vm439_vm3, %v1429_v43, 0.0  ;;  %v621_v55 = vpack.c.bf16 %v619_v51, %v619_v51 }
 0x3fc   : > { %494 = vadd.xlane.f32.xlu0 %v493_v44 }
 0x3fd   : > { %v626_v60 = vsel %vm439_vm3, %v621_v55, 0 }
 0x412   : > { %781 = vrot.lane.b32.xlu0 %v1573_v16, %s1467_s13 }
 0x416   : > { %733 = vrot.lane.b32.xlu0 %v1573_v16, %s1468_s14 }
 0x41a   : > { %746 = vrot.lane.b32.xlu0 %v1573_v16, %s1469_s15 }
 0x41e   : > { %764 = vrot.lane.b32.xlu0 %v1580_v17, %s1467_s13 }
 0x422   : > { %777 = vrot.lane.b32.xlu0 %v1580_v17, %s1466_s12 }
 0x466   : > { %v1395_v53 = vpop.permute.xlu1 %1394 }
 0x467   : > { %v1397_v58 = vunpack.i.h.bf16 %v1395_v53  ;;  %v1396_v59 = vunpack.i.l.bf16 %v1395_v53 }
 0x469   : > { %v584_v62 = vsel %vm400_vm2, %v1396_v59, %v1397_v58 }
 0x46a   : > { %v620_v63 = vpack.c.bf16 %v584_v62, %v584_v62  ;;  %v769_v14 = vpop.permute.xlu1 %768 }
 0x46b   : > { %v771_v15 = vmul.f32 %v769_v14, %v1593_v27 }
 0x489   : > { %v495_v45 = vpop.xlane.xlu0 %494 }
 0x48a   : > { %1430 = vrcp.f32 %v495_v45 }
 0x48d   : > { %v782_v47 = vpop.permute.xlu0 %781 }
 0x48e   : > { %v784_v50 = vmul.f32 %v782_v47, %v1593_v27 }
 0x490   : > { %786 = vrot.lane.b32.xlu0 %v784_v50, %s1456_s23 }
 0x491   : > { %v734_v56 = vpop.permute.xlu0 %733 }
 0x492   : > { %v736_v61 = vmul.f32 %v734_v56, %v1593_v27 }
 0x494   : > { %v1431_v52 = vpop.eup %1430  ;;  %729 = vrot.lane.b32.xlu0 %v1580_v17, %s1469_s15 }
 0x495   : > { %v497_v54 = vmul.f32 %v1431_v52, %v1429_v43  ;;  %v747_v18 = vpop.permute.xlu0 %746 }
 0x496   : > { %v749_v19 = vmul.f32 %v747_v18, %v1593_v27 }
 0x497   : > { %v498_v57 = vpack.c.bf16 %v497_v54, %v497_v54 }
 0x498   : > { %742 = vrot.lane.b32.xlu0 %v1580_v17, %s1468_s14 }
 0x499   : > { %1302 = vmatmul.mubr.msk.bf16.vlgmr.msra.gmra.mrb[4].mxu1 %vm439_vm3, %v498_v57  ;;  %v765_v20 = vpop.permute.xlu0 %764 }
 0x49a   : > { %1306 = vmatpush3.bf16.xpose.msra.mxu1 %v626_v60  ;;  %1307 = vmatprep.mubr.msk.bf16.mxu1 %vm1453_vm1, %v1452_v1  ;;  %v767_v29 = vmul.f32 %v765_v20, %v1593_v27 }
 0x49b   : > { %1311 = vmatprep.subr.bf16.mxu1 %v1452_v1 }
 0x49c   : > { %738 = vrot.lane.b32.xlu0 %v736_v61, %s1457_s27 }
 0x49d   : > { %v778_v21 = vpop.permute.xlu0 %777 }
 0x49e   : > { %v780_v30 = vmul.f32 %v778_v21, %v1593_v27 }
 0x4a1   : > { %1308 = vmatmul.mubr.msk.bf16.vlgmr.msra.gmra.mrb[8].mxu1 %vm439_vm3, %v620_v63 }
 0x4a2   : > { %1313 = vmatprep.mubr.msk.bf16.mxu1 %vm1453_vm1, %v1452_v1 }
 0x502   : > { %v787_v22 = vpop.permute.xlu0 %786 }
 0x503   : > { %v789_v33 = vadd.f32 %v787_v22, %v780_v30 }
 0x506   : > { %v730_v23 = vpop.permute.xlu0 %729 }
 0x507   : > { %v732_v36 = vmul.f32 %v730_v23, %v1593_v27 }
 0x50a   : > { %v743_v24 = vpop.permute.xlu0 %742 }
 0x50b   : > { %v745_v37 = vmul.f32 %v743_v24, %v1593_v27 }
 0x50e   : > { %v739_v35 = vpop.permute.xlu0 %738 }
 0x50f   : > { %v741_v40 = vsub.f32 %v732_v36, %v739_v35 }
 0x56c   : > { %v1688_v0 = vpop.f32.mrb[4].mxu1 }
 0x56d   : > { %v1303_v2 = vpop.f32.mrb[5].mxu1 }
 0x56e   : > { %v547_v3 = vpop.f32.mrb[6].mxu1 }
 0x56f   : > { %v1304_v5 = vpop.f32.mrb[7].mxu1 }
 0x574   : > { %v662_v8 = vpop.f32.mrb[8].mxu1 }
 0x575   : > { %v668_v9 = vsel %vm377_vm4, %v662_v8, -inf  ;;  %v1309_v10 = vpop.f32.mrb[9].mxu1 }
 0x576   : > { %v665_v11 = vpop.f32.mrb[10].mxu1  ;;  %v669_v12 = vsel %vm439_vm3, %v668_v9, -inf }
 0x577   : > { %670 = vmax.xlane.f32.xlu1 %v669_v12  ;;  %v1310_v13 = vpop.f32.mrb[11].mxu1 }
 0x588   : > { %773 = vrot.lane.b32.xlu1 %v771_v15, %s1457_s27 }
 0x58c   : > { %751 = vrot.lane.b32.xlu1 %v749_v19, %s1456_s23 }
 0x590   : > { %681 = vrot.lane.b32.xlu1 %v1654_v25, %s1470_s16 }
 0x604   : > { %v671_v26 = vpop.xlane.xlu1 %670 }
 0x605   : > { %v672_v28 = vsub.f32 %v668_v9, %v671_v26 }
 0x607   : > { %v673_v31 = vmul.f32 1.442695, %v672_v28 }
 0x608   : > { %v774_v32 = vpop.permute.xlu1 %773 }
 0x609   : > { %1432 = vpow2.f32 %v673_v31  ;;  %v776_v34 = vsub.f32 %v767_v29, %v774_v32 }
 0x60b   : > { %v1398_v38 = vpack.i.bf16 %v789_v33, %v776_v34 }
 0x60c   : > { %v752_v39 = vpop.permute.xlu1 %751 }
 0x60d   : > { %v754_v41 = vadd.f32 %v752_v39, %v745_v37  ;;  %1399 = vrot.lane.b32.xlu1 %v1398_v38, %s1471_s17 }
 0x60f   : > { %v1403_v42 = vpack.i.bf16 %v754_v41, %v741_v40 }
 0x610   : > { %v682_v43 = vpop.permute.xlu1 %681 }
 0x611   : > { %v687_v44 = vsel %vm506_vm5, %v682_v43, 0  ;;  %1404 = vrot.lane.b32.xlu1 %v1403_v42, %s1472_s18 }
 0x612   : > { %1312 = vmatpush3.bf16.msra.mxu1 %v687_v44 }
 0x613   : > { %v1433_v45 = vpop.eup %1432  ;;  %1317 = vmatprep.subr.bf16.mxu1 %v1452_v1 }
 0x614   : > { %v675_v46 = vsel %vm439_vm3, %v1433_v45, 0.0 }
 0x615   : > { %676 = vadd.xlane.f32.xlu0 %v675_v46  ;;  %947 = vrot.lane.b32.xlu1 %v1573_v16, %s1473_s19 }
 0x619   : > { %960 = vrot.lane.b32.xlu1 %v1573_v16, %s1470_s16 }
 0x62b   : > { %912 = vrot.lane.b32.xlu0 %v1573_v16, %s1474_s20 }
 0x62f   : > { %925 = vrot.lane.b32.xlu0 %v1573_v16, %s1475_s24 }
 0x633   : > { %943 = vrot.lane.b32.xlu0 %v1580_v17, %s1470_s16 }
 0x67f   : > { %v1400_v47 = vpop.permute.xlu1 %1399 }
 0x680   : > { %v1402_v54 = vunpack.i.h.bf16 %v1400_v47  ;;  %v1401_v55 = vunpack.i.l.bf16 %v1400_v47 }
 0x682   : > { %v798_v59 = vsel %vm400_vm2, %v1401_v55, %v1402_v54 }
 0x683   : > { %v1405_v48 = vpop.permute.xlu1 %1404  ;;  %v800_v62 = vpack.c.bf16 %v798_v59, %v798_v59 }
 0x684   : > { %v1407_v2 = vunpack.i.h.bf16 %v1405_v48  ;;  %v1406_v3 = vunpack.i.l.bf16 %v1405_v48 }
 0x685   : > { %v805_v5 = vsel %vm439_vm3, %v800_v62, 0 }
 0x686   : > { %v763_v8 = vsel %vm400_vm2, %v1406_v3, %v1407_v2 }
 0x687   : > { %v948_v49 = vpop.permute.xlu1 %947  ;;  %v799_v9 = vpack.c.bf16 %v763_v8, %v763_v8 }
 0x688   : > { %v950_v50 = vmul.f32 %v948_v49, %v1593_v27 }
 0x68a   : > { %952 = vrot.lane.b32.xlu0 %v950_v50, %s1457_s27 }
 0x68b   : > { %v961_v51 = vpop.permute.xlu1 %960 }
 0x68c   : > { %v963_v52 = vmul.f32 %v961_v51, %v1593_v27 }
 0x68e   : > { %965 = vrot.lane.b32.xlu0 %v963_v52, %s1456_s23 }
 0x692   : > { %908 = vrot.lane.b32.xlu0 %v1580_v17, %s1475_s24 }
 0x696   : > { %921 = vrot.lane.b32.xlu0 %v1580_v17, %s1474_s20 }
 0x6a2   : > { %v677_v16 = vpop.xlane.xlu0 %676 }
 0x6a3   : > { %1434 = vrcp.f32 %v677_v16 }
 0x6a6   : > { %v913_v53 = vpop.permute.xlu0 %912 }
 0x6a7   : > { %v915_v56 = vmul.f32 %v913_v53, %v1593_v27 }
 0x6aa   : > { %v926_v57 = vpop.permute.xlu0 %925 }
 0x6ab   : > { %v928_v58 = vmul.f32 %v926_v57, %v1593_v27 }
 0x6ad   : > { %v1435_v60 = vpop.eup %1434  ;;  %930 = vrot.lane.b32.xlu0 %v928_v58, %s1456_s23  ;;  %s1476_s23 = smov 72  }
 0x6ae   : > { %v679_v61 = vmul.f32 %v1435_v60, %v1433_v45  ;;  %v944_v10 = vpop.permute.xlu0 %943 }
 0x6af   : > { %v946_v11 = vmul.f32 %v944_v10, %v1593_v27 }
 0x6b0   : > { %v680_v63 = vpack.c.bf16 %v679_v61, %v679_v61 }
 0x6b1   : > { %860 = vrot.lane.b32.xlu0 %v1654_v25, %s1467_s13 }
 0x6b2   : > { %1314 = vmatmul.mubr.msk.bf16.vlgmr.msra.gmra.mrb[12].mxu1 %vm439_vm3, %v680_v63 }
 0x6b3   : > { %1318 = vmatpush3.bf16.xpose.msra.mxu1 %v805_v5  ;;  %1319 = vmatprep.mubr.msk.bf16.mxu1 %vm1453_vm1, %v1452_v1 }
 0x6b4   : > { %1323 = vmatprep.subr.bf16.mxu1 %v1452_v1 }
 0x6ba   : > { %1320 = vmatmul.mubr.msk.bf16.vlgmr.msra.gmra.mrb[16].mxu1 %vm439_vm3, %v799_v9 }
 0x6bb   : > { %1325 = vmatprep.mubr.msk.bf16.mxu1 %vm1453_vm1, %v1452_v1 }
 0x6fc   : > { %v953_v12 = vpop.permute.xlu0 %952 }
 0x6fd   : > { %v955_v13 = vsub.f32 %v946_v11, %v953_v12 }
 0x700   : > { %v966_v14 = vpop.permute.xlu0 %965 }
 0x704   : > { %v909_v15 = vpop.permute.xlu0 %908 }
 0x705   : > { %v911_v18 = vmul.f32 %v909_v15, %v1593_v27 }
 0x708   : > { %v922_v19 = vpop.permute.xlu0 %921 }
 0x709   : > { %v924_v20 = vmul.f32 %v922_v19, %v1593_v27 }
 0x71f   : > { %v931_v21 = vpop.permute.xlu0 %930 }
 0x720   : > { %v933_v22 = vadd.f32 %v931_v21, %v924_v20 }
 0x723   : > { %v861_v23 = vpop.permute.xlu0 %860 }
 0x724   : > { %v866_v24 = vsel %vm506_vm5, %v861_v23, 0  ;;  %v1424_v23 = vld [vmem:[%s1802_s3] sm:$0xff]  }
 0x725   : > { %1324 = vmatpush3.bf16.msra.mxu1 %v866_v24  ;;  %v1123_v24 = vsel %vm250_vm0, %v1424_v23, 0 }
 0x726   : > { %1329 = vmatprep.subr.bf16.mxu1 %v1452_v1  ;;  %1342 = vmatpush3.bf16.xpose.msra.mxu0 %v1123_v24 }
 0x727   : > { %1343 = vmatprep.subr.bf16.mxu0 %v1452_v1 }
 0x785   : > { %v1743_v26 = vpop.f32.mrb[12].mxu1 }
 0x786   : > { %v1315_v28 = vpop.f32.mrb[13].mxu1 }
 0x787   : > { %v726_v29 = vpop.f32.mrb[14].mxu1 }
 0x788   : > { %v1316_v30 = vpop.f32.mrb[15].mxu1 }
 0x78d   : > { %v841_v31 = vpop.f32.mrb[16].mxu1 }
 0x78e   : > { %v847_v32 = vsel %vm377_vm4, %v841_v31, -inf  ;;  %v1321_v33 = vpop.f32.mrb[17].mxu1 }
 0x78f   : > { %v844_v34 = vpop.f32.mrb[18].mxu1  ;;  %v848_v35 = vsel %vm439_vm3, %v847_v32, -inf }
 0x790   : > { %849 = vmax.xlane.f32.xlu1 %v848_v35  ;;  %v1322_v36 = vpop.f32.mrb[19].mxu1 }
 0x7a1   : > { %956 = vrot.lane.b32.xlu1 %v1580_v17, %s1473_s19 }
 0x7a5   : > { %917 = vrot.lane.b32.xlu1 %v915_v56, %s1457_s27 }
 0x81d   : > { %v850_v37 = vpop.xlane.xlu1 %849 }
 0x81e   : > { %v851_v38 = vsub.f32 %v847_v32, %v850_v37 }
 0x820   : > { %v852_v39 = vmul.f32 1.442695, %v851_v38 }
 0x821   : > { %v957_v40 = vpop.permute.xlu1 %956 }
 0x822   : > { %1436 = vpow2.f32 %v852_v39  ;;  %v959_v41 = vmul.f32 %v957_v40, %v1593_v27 }
 0x824   : > { %v968_v42 = vadd.f32 %v966_v14, %v959_v41 }
 0x825   : > { %v918_v43 = vpop.permute.xlu1 %917 }
 0x826   : > { %v920_v44 = vsub.f32 %v911_v18, %v918_v43  ;;  %v1408_v45 = vpack.i.bf16 %v968_v42, %v955_v13 }
 0x828   : > { %v1413_v46 = vpack.i.bf16 %v933_v22, %v920_v44  ;;  %1409 = vrot.lane.b32.xlu0 %v1408_v45, %s1476_s23 }
 0x82c   : > { %v1437_v47 = vpop.eup %1436  ;;  %1414 = vrot.lane.b32.xlu0 %v1413_v46, %s1477_s26 }
 0x82d   : > { %v854_v17 = vsel %vm439_vm3, %v1437_v47, 0.0 }
 0x82e   : > { %855 = vadd.xlane.f32.xlu1 %v854_v17 }
 0x89a   : > { %v1410_v49 = vpop.permute.xlu0 %1409 }
 0x89b   : > { %v1412_v50 = vunpack.i.h.bf16 %v1410_v49  ;;  %v1411_v51 = vunpack.i.l.bf16 %v1410_v49 }
 0x89d   : > { %v977_v27 = vsel %vm400_vm2, %v1411_v51, %v1412_v50 }
 0x89e   : > { %v1415_v16 = vpop.permute.xlu0 %1414  ;;  %v979_v54 = vpack.c.bf16 %v977_v27, %v977_v27 }
 0x89f   : > { %v1417_v56 = vunpack.i.h.bf16 %v1415_v16  ;;  %v1416_v57 = vunpack.i.l.bf16 %v1415_v16 }
 0x8a0   : > { %v984_v58 = vsel %vm439_vm3, %v979_v54, 0 }
 0x8a1   : > { %v942_v59 = vsel %vm400_vm2, %v1416_v57, %v1417_v56 }
 0x8a2   : > { %v978_v60 = vpack.c.bf16 %v942_v59, %v942_v59 }
 0x8bb   : > { %v856_v48 = vpop.xlane.xlu1 %855 }
 0x8bc   : > { %1438 = vrcp.f32 %v856_v48 }
 0x8c6   : > { %v1439_v52 = vpop.eup %1438 }
 0x8c7   : > { %v858_v53 = vmul.f32 %v1439_v52, %v1437_v47 }
 0x8c9   : > { %v859_v55 = vpack.c.bf16 %v858_v53, %v858_v53 }
 0x8cb   : > { %1326 = vmatmul.mubr.msk.bf16.vlgmr.msra.gmra.mrb[20].mxu1 %vm439_vm3, %v859_v55 }
 0x8cc   : > { %1330 = vmatpush3.bf16.xpose.msra.mxu1 %v984_v58  ;;  %1331 = vmatprep.mubr.msk.bf16.mxu1 %vm1453_vm1, %v1452_v1 }
 0x8cd   : > { %1335 = vmatprep.subr.bf16.mxu1 %v1452_v1 }
 0x8d3   : > { %1332 = vmatmul.mubr.msk.bf16.vlgmr.msra.gmra.mrb[24].mxu1 %vm439_vm3, %v978_v60 }
 0x8d4   : > { %1337 = vmatprep.mubr.msk.bf16.mxu1 %vm1453_vm1, %v1452_v1 }
 0x99e   : > { %v902_v61 = vpop.f32.mrb[20].mxu1 }
 0x99f   : > { %v1327_v62 = vpop.f32.mrb[21].mxu1 }
 0x9a0   : > { %v905_v63 = vpop.f32.mrb[22].mxu1 }
 0x9a1   : > { %v1328_v2 = vpop.f32.mrb[23].mxu1 }
 0x9a6   : > { %v1020_v3 = vpop.f32.mrb[24].mxu1 }
 0x9a7   : > { %v1026_v5 = vsel %vm377_vm4, %v1020_v3, -inf  ;;  %v1333_v8 = vpop.f32.mrb[25].mxu1 }
 0x9a8   : > { %v1023_v9 = vpop.f32.mrb[26].mxu1  ;;  %v1027_v10 = vsel %vm439_vm3, %v1026_v5, -inf }
 0x9a9   : > { %1028 = vmax.xlane.f32.xlu0 %v1027_v10  ;;  %v1334_v11 = vpop.f32.mrb[27].mxu1 }
 0x9bf   : > { %1088 = vrot.lane.b32.xlu0 %v1743_v26, %s1460_s30 }
 0xa36   : > { %v1029_v12 = vpop.xlane.xlu0 %1028 }
 0xa37   : > { %v1030_v13 = vsub.f32 %v1026_v5, %v1029_v12 }
 0xa39   : > { %v1031_v14 = vmul.f32 1.442695, %v1030_v13 }
 0xa3a   : > { %v1089_v32 = vpop.permute.xlu0 %1088 }
 0xa3b   : > { %1440 = vpow2.f32 %v1031_v14  ;;  %v1099_v1 = vsel %vm439_vm3, %v1688_v0, %v1089_v32 }
 0xa45   : > { %v1441_v15 = vpop.eup %1440 }
 0xa46   : > { %v1033_v18 = vsel %vm439_vm3, %v1441_v15, 0.0 }
 0xa47   : > { %1034 = vadd.xlane.f32.xlu1 %v1033_v18 }
 0xa58   : > { %1039 = vrot.lane.b32.xlu1 %v1654_v25, %s1458_s28  ;;  %v1425_v25 = vld [vmem:[%s1802_s3 + $0x8] sm:$0xff]  }
 0xa59   : > { %v1126_v26 = vsel %vm250_vm0, %v1425_v25, 0 }
 0xa5a   : > { %1344 = vmatpush3.bf16.xpose.msra.mxu0 %v1126_v26 }
 0xa5c   : > { %1092 = vrot.lane.b32.xlu1 %v902_v61, %s1469_s15 }
 0xad4   : > { %v1035_v6 = vpop.xlane.xlu1 %1034 }
 0xad5   : > { %1442 = vrcp.f32 %v1035_v6 }
 0xad8   : > { %v1040_v7 = vpop.permute.xlu1 %1039 }
 0xad9   : > { %v1045_v19 = vsel %vm506_vm5, %v1040_v7, 0 }
 0xada   : > { %1336 = vmatpush3.bf16.msra.mxu1 %v1045_v19 }
 0xadc   : > { %v1093_v33 = vpop.permute.xlu1 %1092 }
 0xadd   : > { %v1101_v34 = vsel %vm1100_vm6, %v1099_v1, %v1093_v33 }
 0xadf   : > { %v1443_v20 = vpop.eup %1442 }
 0xae0   : > { %v1037_v21 = vmul.f32 %v1443_v20, %v1441_v15 }
 0xae2   : > { %v1038_v22 = vpack.c.bf16 %v1037_v21, %v1037_v21 }
 0xae4   : > { %1338 = vmatmul.mubr.msk.bf16.vlgmr.msra.gmra.mrb[28].mxu1 %vm439_vm3, %v1038_v22 }
 0xbb7   : > { %v1081_v28 = vpop.f32.mrb[28].mxu1 }
 0xbb8   : > { %1096 = vrot.lane.b32.xlu1 %v1081_v28, %s1475_s24  ;;  %v1339_v29 = vpop.f32.mrb[29].mxu1 }
 0xbb9   : > { %v1084_v30 = vpop.f32.mrb[30].mxu1 }
 0xbba   : > { %v1340_v31 = vpop.f32.mrb[31].mxu1 }
 0xc2a   : > { %v1097_v35 = vpop.permute.xlu1 %1096 }
 0xc2b   : > { %v1103_v36 = vsel %vm1102_vm7, %v1101_v34, %v1097_v35 }
 0xc2c   : > { %v1104_v37 = vpack.c.bf16 %v1103_v36, %v1103_v36 }
 0xc2e   : > { %1346 = vmatmul.mubr.msk.bf16.vlgmr.msra.gmra.mrb[4].mxu0 %vm250_vm0, %v1104_v37 }
 0xd01   : > { %v1162_v38 = vpop.f32.mrb[4].mxu0 }
 0xd02   : > { %v1168_v39 = vadd.f32 %v1162_v38, %v1539_v4  ;;  %v1347_v40 = vpop.f32.mrb[5].mxu0 }
 0xd03   : > { %v1165_v41 = vpop.f32.mrb[6].mxu0 }
 0xd04   : > { %1169 = vst.msk [vmem:[%s246_s9] sm:$0xff] %vm250_vm0, %v1168_v39  ;;  %v1348_v42 = vpop.f32.mrb[7].mxu0 }
 0xd05 PF: > { %s16_s21 = sadd.s32 1, %s1450_s21  }
 0xd06   : > { %p13_p4 = scmp.ge.s32.totalorder %s16_s21, 4  }
 0xd08   :  { %15 = sbr.rel (!%p13_p4) target bundleno = 1 (0x1), region = 74 }

</bundles_post_ra>
